<compile_context>
chip_gen: v7x
topology: tpu7x:2x2x1
jax: 0.10.0
libtpu: 0.0.40
codegen_flags: <defaults>
</compile_context>

<pallas_src>
import functools

import jax
import jax.numpy as jnp
from jax.experimental import pallas as pl
from jax.experimental.pallas import tpu as pltpu


def _round_up(x, m):
    return (x + m - 1) // m * m


def _fused_forward_kernel(x_ref, wf_ref, bf_ref, wc_ref, bc_ref, out_ref,
                          *, TB, H, W, C_in, F_pad, NC_pad):
    # x_ref   : (TB, PROWS, C_in)   zero-padded, row-flattened NHWC pixels
    # wf_ref  : (9*C_in, F_pad)     conv weight, tap-major rows, zero-padded cols
    # bf_ref  : (1, F_pad)          conv bias (zero-padded)
    # wc_ref  : (F_pad, NC_pad)     classifier weight (zero-padded)
    # bc_ref  : (1, NC_pad)         classifier bias (zero-padded)
    # out_ref : (1, TB, NC_pad)     logits for this batch tile
    HW = H * W
    bf = bf_ref[...]
    wc = wc_ref[...]
    bc = bc_ref[...]

    # Row masks fixing the horizontal (width) boundary taps of the shifted-slice im2col:
    # an output at w == 0 has no "left" neighbour, w == W-1 has no "right" neighbour.
    col = jax.lax.broadcasted_iota(jnp.int32, (HW, 1), 0) % W
    left_ok = (col != 0).astype(jnp.float32)
    right_ok = (col != W - 1).astype(jnp.float32)

    # adaptive_avg_pool2d(1,1) as an MXU dot (1/HW folded into the ones row).
    inv_hw = jnp.full((1, HW), 1.0 / HW, dtype=jnp.float32)

    for tb in range(TB):  # static unroll over the batch tile
        feat = jnp.zeros((HW, F_pad), jnp.float32)
        for ky in range(3):
            for kx in range(3):
                s = ky * W + kx                       # static window start
                lhs = x_ref[tb, s:s + HW, :]          # (HW, C_in) contiguous slice
                if kx == 0:
                    lhs = lhs * left_ok
                elif kx == 2:
                    lhs = lhs * right_ok
                t = ky * 3 + kx
                w_tap = wf_ref[t * C_in:(t + 1) * C_in, :]   # (C_in, F_pad)
                feat = feat + jnp.dot(lhs, w_tap,
                                      preferred_element_type=jnp.float32)
        feat = jnp.maximum(feat + bf, 0.0)                    # bias + ReLU (VPU)
        pooled = jnp.dot(inv_hw, feat,
                         preferred_element_type=jnp.float32)  # (1, F_pad) global avg pool
        logits = jnp.dot(pooled, wc,
                         preferred_element_type=jnp.float32) + bc   # classifier Linear
        out_ref[0, tb:tb + 1, :] = logits


def dense_net_grad_cam_forward(x_nchw, w_feat, b_feat, w_cls, b_cls, *, batch_tile=1):
    """x_nchw: (B, C_in, H, W) float32.  Returns logits (B, num_classes) float32."""
    B, C, H, W = x_nchw.shape
    K = 9 * C
    C_feat = w_feat.shape[1]
    NC = w_cls.shape[1]
    HW = H * W

    assert w_feat.shape == (K, C_feat)
    assert B % batch_tile == 0, "batch must be divisible by batch_tile"
    TB = batch_tile
    num_tiles = B // TB
    F_pad = _round_up(max(C_feat, 128), 128)
    NC_pad = _round_up(max(NC, 128), 128)

    # ---- host glue: layout only, no 9x im2col materialization -----------------------
    # NCHW -> NHWC -> (B, H*W, C) with a (W+1)-pixel zero halo front/back so every 3x3
    # tap becomes a contiguous HW-row window at static offset ky*W + kx.
    x = jnp.transpose(x_nchw, (0, 2, 3, 1)).astype(jnp.float32)
    x_flat = x.reshape(B, HW, C)
    pad_front = W + 1
    prows = _round_up(pad_front + HW + pad_front, 8)
    pad_back = prows - (pad_front + HW)
    x_flat = jnp.pad(x_flat, ((0, 0), (pad_front, pad_back), (0, 0)))  # (B, prows, C)

    # Zero-pad weights/biases to lane-dense (multiple-of-128) feature / class dims.
    wf_pad = jnp.zeros((K, F_pad), jnp.float32).at[:, :C_feat].set(
        w_feat.astype(jnp.float32))
    bf_pad = jnp.zeros((1, F_pad), jnp.float32).at[:, :C_feat].set(
        b_feat.reshape(1, C_feat).astype(jnp.float32))
    wc_pad = jnp.zeros((F_pad, NC_pad), jnp.float32).at[:C_feat, :NC].set(
        w_cls.astype(jnp.float32))
    bc_pad = jnp.zeros((1, NC_pad), jnp.float32).at[:, :NC].set(
        b_cls.reshape(1, NC).astype(jnp.float32))

    kernel = functools.partial(
        _fused_forward_kernel, TB=TB, H=H, W=W, C_in=C, F_pad=F_pad, NC_pad=NC_pad)

    # ---- single fused kernel: conv stem + bias + ReLU + avg-pool + classifier -------
    logits_pad = pl.pallas_call(
        kernel,
        out_shape=jax.ShapeDtypeStruct((num_tiles, TB, NC_pad), jnp.float32),
        grid_spec=pltpu.PrefetchScalarGridSpec(
            num_scalar_prefetch=0,
            grid=(num_tiles,),
            in_specs=[
                pl.BlockSpec((TB, prows, C), lambda b: (b, 0, 0)),
                pl.BlockSpec((K, F_pad), lambda b: (0, 0)),      # resident conv weight
                pl.BlockSpec((1, F_pad), lambda b: (0, 0)),      # resident conv bias
                pl.BlockSpec((F_pad, NC_pad), lambda b: (0, 0)),  # resident cls weight
                pl.BlockSpec((1, NC_pad), lambda b: (0, 0)),      # resident cls bias
            ],
            out_specs=pl.BlockSpec((1, TB, NC_pad), lambda b: (b, 0, 0)),
        ),
        compiler_params=pltpu.CompilerParams(
            dimension_semantics=("parallel",),
        ),
    )(x_flat, wf_pad, bf_pad, wc_pad, bc_pad)

    logits_pad = logits_pad.reshape(B, NC_pad)
    return logits_pad[:, :NC]


def _reference_forward(x_nchw, w_feat, b_feat, w_cls, b_cls):
    """Pure-JAX reference mirroring the PyTorch forward (explicit im2col convention)."""
    B, C, H, W = x_nchw.shape
    x = jnp.transpose(x_nchw, (0, 2, 3, 1))
    xpad = jnp.pad(x, ((0, 0), (1, 1), (1, 1), (0, 0)))
    patches = jnp.concatenate(
        [xpad[:, dy:dy + H, dx:dx + W, :] for dy in range(3) for dx in range(3)],
        axis=-1,
    ).reshape(B, H * W, 9 * C)
    feat = patches @ w_feat + b_feat                                  # features(x)
    feat = jnp.maximum(feat, 0.0)                                     # relu
    pooled = jnp.mean(feat, axis=1)                                   # adaptive_avg_pool2d(1,1)+flatten
    return pooled @ w_cls + b_cls                                     # classifier


if __name__ == "__main__":
    # Small, deterministic shapes consistent with the module's forward.
    B, C_in, H, W = 2, 4, 16, 16
    C_feat, NUM_CLASSES = 32, 10

    key = jax.random.PRNGKey(0)
    kx, kwf, kbf, kwc, kbc = jax.random.split(key, 5)

    x = jax.random.normal(kx, (B, C_in, H, W), dtype=jnp.float32)

    # Deterministic synthetic parameters.
    w_feat = jax.random.normal(kwf, (9 * C_in, C_feat), dtype=jnp.float32) * 0.1
    b_feat = jax.random.normal(kbf, (1, C_feat), dtype=jnp.float32) * 0.1
    # Classifier weight stored as (C_feat, NUM_CLASSES) == torch Linear weight transposed.
    w_cls = jax.random.normal(kwc, (C_feat, NUM_CLASSES), dtype=jnp.float32) * 0.1
    b_cls = jax.random.normal(kbc, (1, NUM_CLASSES), dtype=jnp.float32) * 0.1

    logits = dense_net_grad_cam_forward(x, w_feat, b_feat, w_cls, b_cls, batch_tile=1)
    logits = jax.block_until_ready(logits)

    ref = _reference_forward(x, w_feat, b_feat, w_cls, b_cls)
    assert logits.shape == (B, NUM_CLASSES)
    assert jnp.allclose(logits, ref, atol=1e-4, rtol=1e-4), "mismatch vs reference"

    print("KERNEL_OK")
</pallas_src>

<mosaic_0001>
module attributes {stable_mosaic.version = 11 : i64} {
  func.func @_fused_forward_kernel(%arg0: i32, %arg1: memref<1x296x4xf32, #tpu.memory_space<vmem>>, %arg2: memref<36x128xf32, #tpu.memory_space<vmem>>, %arg3: memref<1x128xf32, #tpu.memory_space<vmem>>, %arg4: memref<128x128xf32, #tpu.memory_space<vmem>>, %arg5: memref<1x128xf32, #tpu.memory_space<vmem>>, %arg6: memref<1x1x128xf32, #tpu.memory_space<vmem>>) attributes {dimension_semantics = [#tpu.dimension_semantics<parallel>], iteration_bounds = array<i64: 2>, scalar_prefetch = 0 : i64, scratch_operands = 0 : i64, tpu.core_type = #tpu.core_type<tc>, window_params = [{transform_indices = @transform_0, window_bounds = array<i64: 1, 296, 4>}, {pipeline_mode = #tpu.pipeline_mode<synchronous>, transform_indices = @transform_1, window_bounds = array<i64: 36, 128>}, {pipeline_mode = #tpu.pipeline_mode<synchronous>, transform_indices = @transform_2, window_bounds = array<i64: 1, 128>}, {pipeline_mode = #tpu.pipeline_mode<synchronous>, transform_indices = @transform_3, window_bounds = array<i64: 128, 128>}, {pipeline_mode = #tpu.pipeline_mode<synchronous>, transform_indices = @transform_4, window_bounds = array<i64: 1, 128>}, {transform_indices = @transform_5, window_bounds = array<i64: 1, 1, 128>}]} {
    %c0 = arith.constant 0 : index
    %c0_0 = arith.constant 0 : index
    %0 = vector.load %arg3[%c0, %c0_0] : memref<1x128xf32, #tpu.memory_space<vmem>>, vector<1x128xf32>
    %c0_1 = arith.constant 0 : index
    %c0_2 = arith.constant 0 : index
    %1 = vector.load %arg4[%c0_1, %c0_2] : memref<128x128xf32, #tpu.memory_space<vmem>>, vector<128x128xf32>
    %c0_3 = arith.constant 0 : index
    %c0_4 = arith.constant 0 : index
    %2 = vector.load %arg5[%c0_3, %c0_4] : memref<1x128xf32, #tpu.memory_space<vmem>>, vector<1x128xf32>
    %3 = tpu.iota {dimensions = array<i32: 0>} : vector<256x1xi32>
    %c16_i32 = arith.constant 16 : i32
    %c0_i32 = arith.constant 0 : i32
    %4 = arith.cmpi eq, %c16_i32, %c0_i32 : i32
    %c1_i32 = arith.constant 1 : i32
    %5 = arith.select %4, %c1_i32, %c16_i32 : i32
    %6 = vector.broadcast %5 : i32 to vector<256x1xi32>
    %7 = arith.remsi %3, %6 : vector<256x1xi32>
    %c0_i32_5 = arith.constant 0 : i32
    %8 = vector.broadcast %c0_i32_5 : i32 to vector<256x1xi32>
    %9 = arith.cmpi ne, %7, %8 : vector<256x1xi32>
    %c0_i32_6 = arith.constant 0 : i32
    %10 = vector.broadcast %c0_i32_6 : i32 to vector<256x1xi32>
    %11 = arith.cmpi slt, %7, %10 : vector<256x1xi32>
    %c0_i32_7 = arith.constant 0 : i32
    %12 = arith.cmpi slt, %5, %c0_i32_7 : i32
    %13 = vector.broadcast %12 : i1 to vector<256x1xi1>
    %14 = vector.broadcast %13 : vector<256x1xi1> to vector<256x1xi1>
    %15 = arith.xori %11, %14 : vector<256x1xi1>
    %16 = arith.andi %15, %9 : vector<256x1xi1>
    %17 = vector.broadcast %5 : i32 to vector<256x1xi32>
    %18 = arith.addi %7, %17 : vector<256x1xi32>
    %19 = arith.select %16, %18, %7 : vector<256x1xi1>, vector<256x1xi32>
    %c0_i32_8 = arith.constant 0 : i32
    %20 = vector.broadcast %c0_i32_8 : i32 to vector<256x1xi32>
    %21 = arith.cmpi ne, %19, %20 : vector<256x1xi32>
    %22 = arith.extui %21 : vector<256x1xi1> to vector<256x1xi32>
    %23 = arith.sitofp %22 : vector<256x1xi32> to vector<256x1xf32>
    %c15_i32 = arith.constant 15 : i32
    %24 = vector.broadcast %c15_i32 : i32 to vector<256x1xi32>
    %25 = arith.cmpi ne, %19, %24 : vector<256x1xi32>
    %26 = arith.extui %25 : vector<256x1xi1> to vector<256x1xi32>
    %27 = arith.sitofp %26 : vector<256x1xi32> to vector<256x1xf32>
    %cst = arith.constant 3.906250e-03 : f32
    %28 = vector.broadcast %cst : f32 to vector<1x256xf32>
    %cst_9 = arith.constant 0.000000e+00 : f32
    %29 = vector.broadcast %cst_9 : f32 to vector<256x128xf32>
    %c0_10 = arith.constant 0 : index
    %c0_11 = arith.constant 0 : index
    %c0_12 = arith.constant 0 : index
    %30 = vector.load %arg1[%c0_10, %c0_11, %c0_12] : memref<1x296x4xf32, #tpu.memory_space<vmem>>, vector<1x256x4xf32>
    %31 = vector.shape_cast %30 : vector<1x256x4xf32> to vector<256x4xf32>
    %32 = vector.broadcast %23 : vector<256x1xf32> to vector<256x4xf32>
    %33 = arith.mulf %31, %32 : vector<256x4xf32>
    %c0_13 = arith.constant 0 : index
    %c0_14 = arith.constant 0 : index
    %34 = vector.load %arg2[%c0_13, %c0_14] : memref<36x128xf32, #tpu.memory_space<vmem>>, vector<4x128xf32>
    %cst_15 = arith.constant dense<0.000000e+00> : vector<256x128xf32>
    %35 = tpu.matmul %33, %34, %cst_15 {dimension_numbers = #tpu.dot_dimension_numbers<[1], [0], [0], [1], [0, 0, 1, 1], [], []>} : vector<256x4xf32>, vector<4x128xf32>, vector<256x128xf32> -> vector<256x128xf32>
    %36 = arith.addf %29, %35 : vector<256x128xf32>
    %c0_16 = arith.constant 0 : index
    %c1 = arith.constant 1 : index
    %c0_17 = arith.constant 0 : index
    %37 = vector.load %arg1[%c0_16, %c1, %c0_17] : memref<1x296x4xf32, #tpu.memory_space<vmem>>, vector<1x256x4xf32>
    %38 = vector.shape_cast %37 : vector<1x256x4xf32> to vector<256x4xf32>
    %c4 = arith.constant 4 : index
    %c0_18 = arith.constant 0 : index
    %39 = vector.load %arg2[%c4, %c0_18] : memref<36x128xf32, #tpu.memory_space<vmem>>, vector<4x128xf32>
    %cst_19 = arith.constant dense<0.000000e+00> : vector<256x128xf32>
    %40 = tpu.matmul %38, %39, %cst_19 {dimension_numbers = #tpu.dot_dimension_numbers<[1], [0], [0], [1], [0, 0, 1, 1], [], []>} : vector<256x4xf32>, vector<4x128xf32>, vector<256x128xf32> -> vector<256x128xf32>
    %41 = arith.addf %36, %40 : vector<256x128xf32>
    %c0_20 = arith.constant 0 : index
    %c2 = arith.constant 2 : index
    %c0_21 = arith.constant 0 : index
    %42 = vector.load %arg1[%c0_20, %c2, %c0_21] : memref<1x296x4xf32, #tpu.memory_space<vmem>>, vector<1x256x4xf32>
    %43 = vector.shape_cast %42 : vector<1x256x4xf32> to vector<256x4xf32>
    %44 = vector.broadcast %27 : vector<256x1xf32> to vector<256x4xf32>
    %45 = arith.mulf %43, %44 : vector<256x4xf32>
    %c8 = arith.constant 8 : index
    %c0_22 = arith.constant 0 : index
    %46 = vector.load %arg2[%c8, %c0_22] : memref<36x128xf32, #tpu.memory_space<vmem>>, vector<4x128xf32>
    %cst_23 = arith.constant dense<0.000000e+00> : vector<256x128xf32>
    %47 = tpu.matmul %45, %46, %cst_23 {dimension_numbers = #tpu.dot_dimension_numbers<[1], [0], [0], [1], [0, 0, 1, 1], [], []>} : vector<256x4xf32>, vector<4x128xf32>, vector<256x128xf32> -> vector<256x128xf32>
    %48 = arith.addf %41, %47 : vector<256x128xf32>
    %c0_24 = arith.constant 0 : index
    %c16 = arith.constant 16 : index
    %c0_25 = arith.constant 0 : index
    %49 = vector.load %arg1[%c0_24, %c16, %c0_25] : memref<1x296x4xf32, #tpu.memory_space<vmem>>, vector<1x256x4xf32>
    %50 = vector.shape_cast %49 : vector<1x256x4xf32> to vector<256x4xf32>
    %51 = vector.broadcast %23 : vector<256x1xf32> to vector<256x4xf32>
    %52 = arith.mulf %50, %51 : vector<256x4xf32>
    %c12 = arith.constant 12 : index
    %c0_26 = arith.constant 0 : index
    %53 = vector.load %arg2[%c12, %c0_26] : memref<36x128xf32, #tpu.memory_space<vmem>>, vector<4x128xf32>
    %cst_27 = arith.constant dense<0.000000e+00> : vector<256x128xf32>
    %54 = tpu.matmul %52, %53, %cst_27 {dimension_numbers = #tpu.dot_dimension_numbers<[1], [0], [0], [1], [0, 0, 1, 1], [], []>} : vector<256x4xf32>, vector<4x128xf32>, vector<256x128xf32> -> vector<256x128xf32>
    %55 = arith.addf %48, %54 : vector<256x128xf32>
    %c0_28 = arith.constant 0 : index
    %c17 = arith.constant 17 : index
    %c0_29 = arith.constant 0 : index
    %56 = vector.load %arg1[%c0_28, %c17, %c0_29] : memref<1x296x4xf32, #tpu.memory_space<vmem>>, vector<1x256x4xf32>
    %57 = vector.shape_cast %56 : vector<1x256x4xf32> to vector<256x4xf32>
    %c16_30 = arith.constant 16 : index
    %c0_31 = arith.constant 0 : index
    %58 = vector.load %arg2[%c16_30, %c0_31] : memref<36x128xf32, #tpu.memory_space<vmem>>, vector<4x128xf32>
    %cst_32 = arith.constant dense<0.000000e+00> : vector<256x128xf32>
    %59 = tpu.matmul %57, %58, %cst_32 {dimension_numbers = #tpu.dot_dimension_numbers<[1], [0], [0], [1], [0, 0, 1, 1], [], []>} : vector<256x4xf32>, vector<4x128xf32>, vector<256x128xf32> -> vector<256x128xf32>
    %60 = arith.addf %55, %59 : vector<256x128xf32>
    %c0_33 = arith.constant 0 : index
    %c18 = arith.constant 18 : index
    %c0_34 = arith.constant 0 : index
    %61 = vector.load %arg1[%c0_33, %c18, %c0_34] : memref<1x296x4xf32, #tpu.memory_space<vmem>>, vector<1x256x4xf32>
    %62 = vector.shape_cast %61 : vector<1x256x4xf32> to vector<256x4xf32>
    %63 = vector.broadcast %27 : vector<256x1xf32> to vector<256x4xf32>
    %64 = arith.mulf %62, %63 : vector<256x4xf32>
    %c20 = arith.constant 20 : index
    %c0_35 = arith.constant 0 : index
    %65 = vector.load %arg2[%c20, %c0_35] : memref<36x128xf32, #tpu.memory_space<vmem>>, vector<4x128xf32>
    %cst_36 = arith.constant dense<0.000000e+00> : vector<256x128xf32>
    %66 = tpu.matmul %64, %65, %cst_36 {dimension_numbers = #tpu.dot_dimension_numbers<[1], [0], [0], [1], [0, 0, 1, 1], [], []>} : vector<256x4xf32>, vector<4x128xf32>, vector<256x128xf32> -> vector<256x128xf32>
    %67 = arith.addf %60, %66 : vector<256x128xf32>
    %c0_37 = arith.constant 0 : index
    %c32 = arith.constant 32 : index
    %c0_38 = arith.constant 0 : index
    %68 = vector.load %arg1[%c0_37, %c32, %c0_38] : memref<1x296x4xf32, #tpu.memory_space<vmem>>, vector<1x256x4xf32>
    %69 = vector.shape_cast %68 : vector<1x256x4xf32> to vector<256x4xf32>
    %70 = vector.broadcast %23 : vector<256x1xf32> to vector<256x4xf32>
    %71 = arith.mulf %69, %70 : vector<256x4xf32>
    %c24 = arith.constant 24 : index
    %c0_39 = arith.constant 0 : index
    %72 = vector.load %arg2[%c24, %c0_39] : memref<36x128xf32, #tpu.memory_space<vmem>>, vector<4x128xf32>
    %cst_40 = arith.constant dense<0.000000e+00> : vector<256x128xf32>
    %73 = tpu.matmul %71, %72, %cst_40 {dimension_numbers = #tpu.dot_dimension_numbers<[1], [0], [0], [1], [0, 0, 1, 1], [], []>} : vector<256x4xf32>, vector<4x128xf32>, vector<256x128xf32> -> vector<256x128xf32>
    %74 = arith.addf %67, %73 : vector<256x128xf32>
    %c0_41 = arith.constant 0 : index
    %c33 = arith.constant 33 : index
    %c0_42 = arith.constant 0 : index
    %75 = vector.load %arg1[%c0_41, %c33, %c0_42] : memref<1x296x4xf32, #tpu.memory_space<vmem>>, vector<1x256x4xf32>
    %76 = vector.shape_cast %75 : vector<1x256x4xf32> to vector<256x4xf32>
    %c28 = arith.constant 28 : index
    %c0_43 = arith.constant 0 : index
    %77 = vector.load %arg2[%c28, %c0_43] : memref<36x128xf32, #tpu.memory_space<vmem>>, vector<4x128xf32>
    %cst_44 = arith.constant dense<0.000000e+00> : vector<256x128xf32>
    %78 = tpu.matmul %76, %77, %cst_44 {dimension_numbers = #tpu.dot_dimension_numbers<[1], [0], [0], [1], [0, 0, 1, 1], [], []>} : vector<256x4xf32>, vector<4x128xf32>, vector<256x128xf32> -> vector<256x128xf32>
    %79 = arith.addf %74, %78 : vector<256x128xf32>
    %c0_45 = arith.constant 0 : index
    %c34 = arith.constant 34 : index
    %c0_46 = arith.constant 0 : index
    %80 = vector.load %arg1[%c0_45, %c34, %c0_46] : memref<1x296x4xf32, #tpu.memory_space<vmem>>, vector<1x256x4xf32>
    %81 = vector.shape_cast %80 : vector<1x256x4xf32> to vector<256x4xf32>
    %82 = vector.broadcast %27 : vector<256x1xf32> to vector<256x4xf32>
    %83 = arith.mulf %81, %82 : vector<256x4xf32>
    %c32_47 = arith.constant 32 : index
    %c0_48 = arith.constant 0 : index
    %84 = vector.load %arg2[%c32_47, %c0_48] : memref<36x128xf32, #tpu.memory_space<vmem>>, vector<4x128xf32>
    %cst_49 = arith.constant dense<0.000000e+00> : vector<256x128xf32>
    %85 = tpu.matmul %83, %84, %cst_49 {dimension_numbers = #tpu.dot_dimension_numbers<[1], [0], [0], [1], [0, 0, 1, 1], [], []>} : vector<256x4xf32>, vector<4x128xf32>, vector<256x128xf32> -> vector<256x128xf32>
    %86 = arith.addf %79, %85 : vector<256x128xf32>
    %87 = vector.broadcast %0 : vector<1x128xf32> to vector<256x128xf32>
    %88 = arith.addf %86, %87 : vector<256x128xf32>
    %cst_50 = arith.constant 0.000000e+00 : f32
    %89 = vector.broadcast %cst_50 : f32 to vector<256x128xf32>
    %90 = arith.maximumf %88, %89 : vector<256x128xf32>
    %cst_51 = arith.constant dense<0.000000e+00> : vector<1x128xf32>
    %91 = tpu.matmul %28, %90, %cst_51 {dimension_numbers = #tpu.dot_dimension_numbers<[1], [0], [0], [1], [0, 0, 1, 1], [], []>} : vector<1x256xf32>, vector<256x128xf32>, vector<1x128xf32> -> vector<1x128xf32>
    %cst_52 = arith.constant dense<0.000000e+00> : vector<1x128xf32>
    %92 = tpu.matmul %91, %1, %cst_52 {dimension_numbers = #tpu.dot_dimension_numbers<[1], [0], [0], [1], [0, 0, 1, 1], [], []>} : vector<1x128xf32>, vector<128x128xf32>, vector<1x128xf32> -> vector<1x128xf32>
    %93 = arith.addf %92, %2 : vector<1x128xf32>
    %c0_53 = arith.constant 0 : index
    %c0_54 = arith.constant 0 : index
    %c0_55 = arith.constant 0 : index
    %94 = vector.load %arg6[%c0_53, %c0_54, %c0_55] : memref<1x1x128xf32, #tpu.memory_space<vmem>>, vector<1x1x128xf32>
    %95 = vector.shape_cast %94 : vector<1x1x128xf32> to vector<1x128xf32>
    %96 = vector.shape_cast %93 : vector<1x128xf32> to vector<1x1x128xf32>
    tpu.vector_store %arg6[%c0_53, %c0_54, %c0_55], %96 {strides = array<i32>} : memref<1x1x128xf32, #tpu.memory_space<vmem>>, vector<1x1x128xf32>,
    return
  }
  func.func @transform_0(%arg0: i32) -> (i32, i32, i32) {
    %c0_i32 = arith.constant 0 : i32
    %c0_i32_0 = arith.constant 0 : i32
    %c0_i32_1 = arith.constant 0 : i32
    return %arg0, %c0_i32, %c0_i32_0 : i32, i32, i32
  }
  func.func @transform_1(%arg0: i32) -> (i32, i32) {
    %c0_i32 = arith.constant 0 : i32
    %c0_i32_0 = arith.constant 0 : i32
    %c0_i32_1 = arith.constant 0 : i32
    return %c0_i32, %c0_i32_0 : i32, i32
  }
  func.func @transform_2(%arg0: i32) -> (i32, i32) {
    %c0_i32 = arith.constant 0 : i32
    %c0_i32_0 = arith.constant 0 : i32
    %c0_i32_1 = arith.constant 0 : i32
    return %c0_i32, %c0_i32_0 : i32, i32
  }
  func.func @transform_3(%arg0: i32) -> (i32, i32) {
    %c0_i32 = arith.constant 0 : i32
    %c0_i32_0 = arith.constant 0 : i32
    %c0_i32_1 = arith.constant 0 : i32
    return %c0_i32, %c0_i32_0 : i32, i32
  }
  func.func @transform_4(%arg0: i32) -> (i32, i32) {
    %c0_i32 = arith.constant 0 : i32
    %c0_i32_0 = arith.constant 0 : i32
    %c0_i32_1 = arith.constant 0 : i32
    return %c0_i32, %c0_i32_0 : i32, i32
  }
  func.func @transform_5(%arg0: i32) -> (i32, i32, i32) {
    %c0_i32 = arith.constant 0 : i32
    %c0_i32_0 = arith.constant 0 : i32
    %c0_i32_1 = arith.constant 0 : i32
    return %arg0, %c0_i32, %c0_i32_0 : i32, i32, i32
  }
}

</mosaic_0001>

<bundles_post_ra>
// kernel: tpu_custom_call.1
= control target key start
LH: loop header
LB: loop body
LE: loop exit
PB: predicated region body
PF: predicated region fallthrough
CT: control target
= control target key end

     0   :  { %10 = vsyncpa [#allocation3], 0  ;;  %s7736_s0 = inlined_call_operand.vmem [shape: f32[2,296,4], index: 0, kind: input, shape index: {}]   ;;  %s7737_s1 = inlined_call_operand.vmem [shape: f32[36,128], index: 1, kind: input, shape index: {}]   ;;  %s7738_s2 = inlined_call_operand.vmem [shape: f32[1,128], index: 2, kind: input, shape index: {}]   ;;  %s7739_s3 = inlined_call_operand.vmem [shape: f32[128,128], index: 3, kind: input, shape index: {}]   ;;  %s7740_s4 = inlined_call_operand.vmem [shape: f32[1,128], index: 4, kind: input, shape index: {}]   ;;  %s7741_s5 = inlined_call_operand.hbm [shape: f32[2,1,128], index: 5, kind: output, shape index: {}]  }
   0x1   :  { %12 = vsyncpa [#allocation3 + $0x1], 0  ;;  %s6386_s18 = smov 0   ;;  %s6388_s19 = smov 0  }
   0x2   :  { %s6390_s20 = smov 0   ;;  %s6392_s21 = smov 0  }
   0x3 LB: > { %s6407_s22 = sadd.s32 4294967295, %s6349_s21   ;;  %s4759_s23 = sadd.s32 4294967294, %s6349_s21   ;;  %s6349_s21 = sphi %s6392_s21, %s7941_s21   ;;  %s6345_s20 = sphi %s6390_s20, %s7940_s20   ;;  %s6341_s19 = sphi %s6388_s19, %s7939_s19   ;;  %s6337_s18 = sphi %s6386_s18, %s7938_s18  }
   0x4   : > { %s6411_s24 = sadd.s32 1, %s6349_s21   ;;  %s135_s25 = sadd.s32 1, %s6345_s20 }
   0x5   : > { %s132_s26 = ssub.s32 %s6349_s21, %s6411_s24  ;;  %p145_p0 = scmp.ne.s32.totalorder %s6345_s20, %s6341_s19 }
   0x6   : > { %p133_p1 = scmp.eq.s32.totalorder %s132_s26, 0  ;;  %p146_p2 = scmp.eq.s32.totalorder %s6407_s22, 1 }
   0x7   : > { %p151_p3 = scmp.ne.s32.totalorder %s6341_s19, %s6337_s18  ;;  %p152_p4 = scmp.eq.s32.totalorder %s4759_s23, 1 }
   0x8   : > { %s6422_s27 = scalar_select %p133_p1, %s6345_s20, %s135_s25  }
   0x9   : > { %p6424_p5 = por %p146_p2, %p145_p0  ;;  %p6428_p6 = por %p152_p4, %p151_p3 }
   0xa   : > { %p4762_p7 = scmp.ge.s32.totalorder %s6349_s21, 1  ;;  %p190_p8 = scmp.lt.s32.totalorder %s6349_s21, 3 }
   0xc   : > { %p191_p9 = pnand %p4762_p7, %p190_p8 }
   0xe   : > { %194 = sbr.rel (%p191_p9) target bundleno = 1014 (0x3f6), region = 40 }
  0x15   : > { %v946_v0 = vld [vmem:[%s7737_s1 + $0x4] sm:$0xf]  ;;  %vm1044_vm0 = vcmask 1043456   ;;  %v2471_v1 = vld [vmem:[%s7737_s1 + $0x10] sm:$0xf]  ;;  %p217_p10 = scmp.lt.s32.totalorder %s6407_s22, 1  ;;  %v240_v31 = vlaneseq }
  0x16   : > { %5446 = vmatprep.subr.msk.mxu1 %vm1044_vm0, %v946_v0  ;;  %5646 = vmatprep.subr.msk.mxu0 %vm1044_vm0, %v2471_v1  ;;  %v2892_v2 = vld [vmem:[%s7737_s1 + $0x14] sm:$0xf]  ;;  %v913_v3 = vld [vmem:[%s7737_s1] sm:$0xf]  ;;  %vm947_vm1 = vcmask 31744   ;;  %v7742_v48 = vmov 0.0  }
  0x17   : > { %5447 = vmatpush3.msk.msra.mxu1 %vm1044_vm0, %v946_v0  ;;  %s218_s13 = scalar_select %p217_p10, %s6407_s22, 1  ;;  %5647 = vmatpush3.msk.msra.mxu0 %vm1044_vm0, %v2471_v1  ;;  %v6471_v9 = vld [vmem:[%s7737_s1 + $0x18] sm:$0xf]  ;;  %v6476_v10 = vld [vmem:[%s7737_s1 + $0x8] sm:$0xf]  ;;  %v6548_v34 = vshrl.u32 %v240_v31, 7 }
  0x18   : > { %5696 = vmatprep.subr.msk.mxu0 %vm1044_vm0, %v2892_v2  ;;  %5496 = vmatprep.subr.msk.mxu1 %vm1044_vm0, %v913_v3 }
  0x19   : > { %s6243_s14 = smul.u32 296, %s218_s13  ;;  %v242_v37 = vadd.s32 8, %v6548_v34  ;;  %v277_v38 = vand.u32 15, %v6548_v34  ;;  %v243_v39 = vadd.s32 16, %v6548_v34  ;;  %v244_v43 = vadd.s32 24, %v6548_v34 }
  0x1a   : > { %v245_v45 = vadd.s32 32, %v6548_v34  ;;  %v246_v52 = vadd.s32 40, %v6548_v34  ;;  %v247_v54 = vadd.s32 48, %v6548_v34  ;;  %v248_v63 = vadd.s32 56, %v6548_v34 }
  0x1b   : > { %s6457_s17 = scalar_lea.vmem %s7736_s0, %s6243_s14  ;;  %v284_v42 = vand.u32 15, %v242_v37  ;;  %vm657_vm2 = vcmp.ne.s32.totalorder %v277_v38, 0  ;;  %v291_v44 = vand.u32 15, %v243_v39  ;;  %v298_v51 = vand.u32 15, %v244_v43  ;;  %s215_s14 = sand.u32 1, %s6341_s19  }
  0x1c   : > { %v914_v4 = vld [vmem:[%s6457_s17 + $0x1] sm:$0xff]  ;;  %v2439_v5 = vld [vmem:[%s6457_s17 + $0x11] sm:$0xff]  ;;  %v915_v6 = vld [vmem:[%s6457_s17 + $0x9] sm:$0xff]  ;;  %v6574_v49 = vsel %vm657_vm2, 1.0, %v7742_v48  ;;  %v305_v53 = vand.u32 15, %v245_v45  ;;  %v312_v62 = vand.u32 15, %v246_v52 }
  0x1d   : > { %5448 = vmatprep.mubr.msk.f32.mxu1 %vm947_vm1, %v914_v4  ;;  %5648 = vmatprep.mubr.msk.f32.mxu0 %vm947_vm1, %v2439_v5  ;;  %v2440_v7 = vld [vmem:[%s6457_s17 + $0x19] sm:$0xff]  ;;  %v2441_v8 = vld [vmem:[%s6457_s17 + $0x21] sm:$0xff]  ;;  %v2442_v11 = vld [vmem:[%s6457_s17 + $0x29] sm:$0xff]  ;;  %vm754_vm3 = vcmp.ne.s32.totalorder %v284_v42, 15  ;;  %vm659_vm4 = vcmp.ne.s32.totalorder %v291_v44, 0  ;;  %vm756_vm5 = vcmp.ne.s32.totalorder %v298_v51, 15 }
  0x1e   : > { %5449 = vmatmul.mubr.msk.f32.vlgmr.msra.gmra.mrb[0].mxu1 %vm947_vm1, %v915_v6  ;;  %5649 = vmatmul.mubr.msk.f32.vlgmr.msra.gmra.mrb[0].mxu0 %vm947_vm1, %v2440_v7  ;;  %v2443_v12 = vld [vmem:[%s6457_s17 + $0x31] sm:$0xff]  ;;  %v2444_v13 = vld [vmem:[%s6457_s17 + $0x39] sm:$0xff]  ;;  %v2445_v14 = vld [vmem:[%s6457_s17 + $0x41] sm:$0xff]  ;;  %v6586_v57 = vsel %vm754_vm3, 1.0, %v7742_v48  ;;  %v6595_v60 = vsel %vm659_vm4, 1.0, %v7742_v48  ;;  %vm661_vm6 = vcmp.ne.s32.totalorder %v305_v53, 0 }
  0x1f   : > { %5451 = vmatprep.mubr.msk.f32.mxu1 %vm947_vm1, %v2439_v5  ;;  %5651 = vmatprep.mubr.msk.f32.mxu0 %vm947_vm1, %v2441_v8  ;;  %v2446_v15 = vld [vmem:[%s6457_s17 + $0x49] sm:$0xff]  ;;  %v2447_v16 = vld [vmem:[%s6457_s17 + $0x51] sm:$0xff]  ;;  %v2448_v17 = vld [vmem:[%s6457_s17 + $0x59] sm:$0xff]  ;;  %v319_v0 = vand.u32 15, %v247_v54  ;;  %v249_v1 = vadd.s32 64, %v6548_v34  ;;  %v6613_v6 = vsel %vm756_vm5, 1.0, %v7742_v48 }
  0x20   : > { %5697 = vmatpush3.msk.msra.mxu0 %vm1044_vm0, %v2892_v2  ;;  %5497 = vmatpush3.msk.msra.mxu1 %vm1044_vm0, %v913_v3  ;;  %v2449_v18 = vld [vmem:[%s6457_s17 + $0x61] sm:$0xff]  ;;  %v2450_v19 = vld [vmem:[%s6457_s17 + $0x69] sm:$0xff]  ;;  %v2451_v20 = vld [vmem:[%s6457_s17 + $0x71] sm:$0xff]  ;;  %vm6627_vm7 = vcmp.ne.s32.totalorder %v312_v62, 15  ;;  %v254_v45 = vadd.s32 104, %v6548_v34  ;;  %s216_s23 = scalar_lea.vmem [#allocation2], %s215_s14 }
  0x21   : > { %5746 = vmatprep.subr.msk.mxu0 %vm1044_vm0, %v6471_v9  ;;  %5546 = vmatprep.subr.msk.mxu1 %vm1044_vm0, %v6476_v10  ;;  %v2452_v21 = vld [vmem:[%s6457_s17 + $0x79] sm:$0xff]  ;;  %v2453_v22 = vld [vmem:[%s6457_s17 + $0x81] sm:$0xff]  ;;  %v2454_v23 = vld [vmem:[%s6457_s17 + $0x89] sm:$0xff]  ;;  %vm6632_vm8 = vcmp.ne.s32.totalorder %v319_v0, 0  ;;  %v256_v0 = vadd.s32 120, %v6548_v34  ;;  %s4704_s25 = sshll.u32 %s216_s23, 4  ;;  %s7696_s25 = int_to_ptr.vmem [resolvable:$true] %s4704_s25 }
  0x22   : > { %5452 = vmatmul.mubr.msk.f32.gmra.mrb[2].mxu1 %vm947_vm1, %v2440_v7  ;;  %5652 = vmatmul.mubr.msk.f32.gmra.mrb[2].mxu0 %vm947_vm1, %v2442_v11  ;;  %v2455_v24 = vld [vmem:[%s6457_s17 + $0x91] sm:$0xff]  ;;  %v2456_v25 = vld [vmem:[%s6457_s17 + $0x99] sm:$0xff]  ;;  %v2457_v26 = vld [vmem:[%s6457_s17 + $0xa1] sm:$0xff]  ;;  %s4692_s7 = scalar_lea.sflag [#allocation3], %s215_s14  ;;  %s6287_s8 = scalar_lea.vmem %s7696_s25, 16 }
  0x23   : > { %5454 = vmatprep.mubr.msk.f32.mxu1 %vm947_vm1, %v2441_v8  ;;  %5654 = vmatprep.mubr.msk.f32.mxu0 %vm947_vm1, %v2443_v12  ;;  %v2458_v27 = vld [vmem:[%s6457_s17 + $0xa9] sm:$0xff]  ;;  %v2459_v28 = vld [vmem:[%s6457_s17 + $0xb1] sm:$0xff]  ;;  %v2460_v29 = vld [vmem:[%s6457_s17 + $0xb9] sm:$0xff]  ;;  %p6288_p11 = scmp.ne.s32.totalorder %s7696_s25, %s6287_s8 }
  0x24   : > { %v2461_v30 = vld [vmem:[%s6457_s17 + $0xc1] sm:$0xff]  ;;  %v2462_v32 = vld [vmem:[%s6457_s17 + $0xc9] sm:$0xff]  ;;  %v2463_v33 = vld [vmem:[%s6457_s17 + $0xd1] sm:$0xff] }
  0x25   : > { %v2464_v35 = vld [vmem:[%s6457_s17 + $0xd9] sm:$0xff]  ;;  %v2465_v36 = vld [vmem:[%s6457_s17 + $0xe1] sm:$0xff]  ;;  %v2466_v40 = vld [vmem:[%s6457_s17 + $0xe9] sm:$0xff]  ;;  %p6289_p12 = pnand %p6288_p11, %p6424_p5 }
  0x26   : > { %5455 = vmatmul.mubr.msk.f32.gmra.mrb[4].mxu1 %vm947_vm1, %v2442_v11  ;;  %5655 = vmatmul.mubr.msk.f32.gmra.mrb[4].mxu0 %vm947_vm1, %v2444_v13  ;;  %v2467_v41 = vld [vmem:[%s6457_s17 + $0xf1] sm:$0xff]  ;;  %v2468_v46 = vld [vmem:[%s6457_s17 + $0xf9] sm:$0xff]  ;;  %v2469_v47 = vld [vmem:[%s6457_s17 + $0x101] sm:$0xff]  ;;  %v6622_v11 = vsel %vm661_vm6, 1.0, %v7742_v48 }
  0x27   : > { %5457 = vmatprep.mubr.msk.f32.mxu1 %vm947_vm1, %v2443_v12  ;;  %5657 = vmatprep.mubr.msk.f32.mxu0 %vm947_vm1, %v2445_v14  ;;  %v849_v50 = vld [vmem:[%s6457_s17] sm:$0xff]  ;;  %v2470_v55 = vld [vmem:[%s6457_s17 + $0x109] sm:$0xff]  ;;  %v6592_v59 = vld [vmem:[%s6457_s17 + $0x12] sm:$0xff]  ;;  %p6290_p13 = pneg %p6289_p12 }
  0x28   : > { %v881_v56 = vmul.f32 %v6574_v49, %v849_v50  ;;  %v6589_v58 = vld [vmem:[%s6457_s17 + $0x1a] sm:$0xff]  ;;  %v851_v61 = vld [vmem:[%s6457_s17 + $0x10] sm:$0xff]  ;;  %v850_v4 = vld [vmem:[%s6457_s17 + $0x8] sm:$0xff] }
  0x29   : > { %v2861_v2 = vmul.f32 %v6586_v57, %v6589_v58  ;;  %v6605_v3 = vmul.f32 %v6574_v49, %v851_v61  ;;  %v883_v5 = vmul.f32 %v6595_v60, %v851_v61  ;;  %v6616_v7 = vld [vmem:[%s6457_s17 + $0x2a] sm:$0xff]  ;;  %v6619_v8 = vld [vmem:[%s6457_s17 + $0x22] sm:$0xff]  ;;  %v6751_v52 = vld [vmem:[%s6457_s17 + $0x38] sm:$0xff] }
  0x2a   : > { %5458 = vmatmul.mubr.msk.f32.gmra.mrb[6].mxu1 %vm947_vm1, %v2444_v13  ;;  %5658 = vmatmul.mubr.msk.f32.gmra.mrb[6].mxu0 %vm947_vm1, %v2446_v15  ;;  %v6625_v12 = vld [vmem:[%s6457_s17 + $0x20] sm:$0xff]  ;;  %v6713_v37 = vld [vmem:[%s6457_s17 + $0x28] sm:$0xff]  ;;  %v6768_v62 = vld [vmem:[%s6457_s17 + $0x50] sm:$0xff] }
  0x2b   : > { %5460 = vmatprep.mubr.msk.f32.mxu1 %vm947_vm1, %v2445_v14  ;;  %5660 = vmatprep.mubr.msk.f32.mxu0 %vm947_vm1, %v2447_v16  ;;  %7823 = vst [vmem:[#allocation5_spill] sm:$0xff] %v6605_v3  ;;  %v326_v14 = vand.u32 15, %v248_v63  ;;  %v6734_v43 = vld [vmem:[%s6457_s17 + $0x40] sm:$0xff]  ;;  %v368_v63 = vand.u32 15, %v254_v45  ;;  %v6785_v13 = vld [vmem:[%s6457_s17 + $0x48] sm:$0xff]  ;;  %v6830_v45 = vld [vmem:[%s6457_s17 + $0x72] sm:$0xff] }
  0x2c   : > { %7838 = vst [vmem:[#allocation12_spill] sm:$0xff] %v6830_v45 }
  0x2d   : > { %vm6682_vm9 = vcmp.ne.s32.totalorder %v326_v14, 15  ;;  %vm766_vm15 = vcmp.ne.s32.totalorder %v368_v63, 15 }
  0x2e   : > { %5461 = vmatmul.mubr.msk.f32.gmra.mrb[8].mxu1 %vm947_vm1, %v2446_v15  ;;  %5661 = vmatmul.mubr.msk.f32.gmra.mrb[8].mxu0 %vm947_vm1, %v2448_v17  ;;  %v250_v15 = vadd.s32 72, %v6548_v34  ;;  %v6720_v39 = vsel %vm6682_vm9, 1.0, %v7742_v48 }
  0x2f   : > { %5463 = vmatprep.mubr.msk.f32.mxu1 %vm947_vm1, %v2447_v16  ;;  %5663 = vmatprep.mubr.msk.f32.mxu0 %vm947_vm1, %v2449_v18  ;;  %v6793_v16 = vld [vmem:[%s6457_s17 + $0x6a] sm:$0xff] }
  0x30   : > { %v340_v31 = vand.u32 15, %v250_v15 }
  0x32   : > { %5464 = vmatmul.mubr.msk.f32.gmra.mrb[10].mxu1 %vm947_vm1, %v2448_v17  ;;  %5664 = vmatmul.mubr.msk.f32.gmra.mrb[10].mxu0 %vm947_vm1, %v2450_v19  ;;  %v333_v17 = vand.u32 15, %v249_v1  ;;  %vm762_vm11 = vcmp.ne.s32.totalorder %v340_v31, 15 }
  0x33   : > { %5466 = vmatprep.mubr.msk.f32.mxu1 %vm947_vm1, %v2449_v18  ;;  %5666 = vmatprep.mubr.msk.f32.mxu0 %vm947_vm1, %v2451_v20  ;;  %v251_v18 = vadd.s32 80, %v6548_v34  ;;  %v6756_v54 = vsel %vm762_vm11, 1.0, %v7742_v48 }
  0x34   : > { %vm6691_vm10 = vcmp.ne.s32.totalorder %v333_v17, 0  ;;  %v6796_v17 = vld [vmem:[%s6457_s17 + $0x62] sm:$0xff] }
  0x35   : > { %v6731_v42 = vsel %vm6691_vm10, 1.0, %v7742_v48 }
  0x36   : > { %5467 = vmatmul.mubr.msk.f32.gmra.mrb[12].mxu1 %vm947_vm1, %v2450_v19  ;;  %5667 = vmatmul.mubr.msk.f32.gmra.mrb[12].mxu0 %vm947_vm1, %v2452_v21  ;;  %v2863_v19 = vmul.f32 %v6613_v6, %v6616_v7  ;;  %v889_v53 = vmul.f32 %v6731_v42, %v6734_v43 }
  0x37   : > { %5469 = vmatprep.mubr.msk.f32.mxu1 %vm947_vm1, %v2451_v20  ;;  %5669 = vmatprep.mubr.msk.f32.mxu0 %vm947_vm1, %v2453_v22  ;;  %v6644_v20 = vld [vmem:[%s7737_s1 + $0x1c] sm:$0xf] }
  0x3a   : > { %5470 = vmatmul.mubr.msk.f32.gmra.mrb[14].mxu1 %vm947_vm1, %v2452_v21  ;;  %5670 = vmatmul.mubr.msk.f32.gmra.mrb[14].mxu0 %vm947_vm1, %v2454_v23  ;;  %v6649_v21 = vld [vmem:[%s7737_s1 + $0xc] sm:$0xf] }
  0x3b   : > { %5472 = vmatprep.mubr.msk.f32.mxu1 %vm947_vm1, %v2453_v22  ;;  %5672 = vmatprep.mubr.msk.f32.mxu0 %vm947_vm1, %v2455_v24  ;;  %v6653_v22 = vmul.f32 %v6595_v60, %v6625_v12 }
  0x3d   : > { %7828 = vst [vmem:[#allocation6_spill] sm:$0xff] %v6653_v22 }
  0x3e   : > { %5473 = vmatmul.mubr.msk.f32.gmra.mrb[16].mxu1 %vm947_vm1, %v2454_v23  ;;  %5673 = vmatmul.mubr.msk.f32.gmra.mrb[16].mxu0 %vm947_vm1, %v2456_v25  ;;  %v6659_v23 = vld [vmem:[%s6457_s17 + $0x18] sm:$0xff] }
  0x3f   : > { %5475 = vmatprep.mubr.msk.f32.mxu1 %vm947_vm1, %v2455_v24  ;;  %5675 = vmatprep.mubr.msk.f32.mxu0 %vm947_vm1, %v2457_v26  ;;  %7829 = vst [vmem:[#allocation7_spill] sm:$0xff] %v6659_v23  ;;  %v885_v24 = vmul.f32 %v6622_v11, %v6625_v12 }
  0x42   : > { %5476 = vmatmul.mubr.msk.f32.gmra.mrb[18].mxu1 %vm947_vm1, %v2456_v25  ;;  %5676 = vmatmul.mubr.msk.f32.gmra.mrb[18].mxu0 %vm947_vm1, %v2458_v27  ;;  %v6666_v25 = vsel %vm6627_vm7, 1.0, %v7742_v48 }
  0x43   : > { %5478 = vmatprep.mubr.msk.f32.mxu1 %vm947_vm1, %v2457_v26  ;;  %5678 = vmatprep.mubr.msk.f32.mxu0 %vm947_vm1, %v2459_v28  ;;  %v6669_v26 = vld [vmem:[%s6457_s17 + $0x3a] sm:$0xff] }
  0x46   : > { %5479 = vmatmul.mubr.msk.f32.gmra.mrb[20].mxu1 %vm947_vm1, %v2458_v27  ;;  %5679 = vmatmul.mubr.msk.f32.gmra.mrb[20].mxu0 %vm947_vm1, %v2460_v29  ;;  %v6672_v27 = vld [vmem:[%s6457_s17 + $0x32] sm:$0xff] }
  0x47   : > { %5481 = vmatprep.mubr.msk.f32.mxu1 %vm947_vm1, %v2459_v28  ;;  %5681 = vmatprep.mubr.msk.f32.mxu0 %vm947_vm1, %v2461_v30  ;;  %v6677_v28 = vsel %vm6632_vm8, 1.0, %v7742_v48 }
  0x48   : > { %v6745_v51 = vmul.f32 %v6677_v28, %v6734_v43 }
  0x4a   : > { %5482 = vmatmul.mubr.msk.f32.gmra.mrb[22].mxu1 %vm947_vm1, %v2460_v29  ;;  %5682 = vmatmul.mubr.msk.f32.gmra.mrb[22].mxu0 %vm947_vm1, %v2462_v32  ;;  %v6680_v29 = vld [vmem:[%s6457_s17 + $0x30] sm:$0xff]  ;;  %7835 = vst [vmem:[#allocation9_spill] sm:$0xff] %v6745_v51  ;;  %v6887_v51 = vld [vmem:[%s6457_s17 + $0x9a] sm:$0xff] }
  0x4b   : > { %5484 = vmatprep.mubr.msk.f32.mxu1 %vm947_vm1, %v2461_v30  ;;  %5684 = vmatprep.mubr.msk.f32.mxu0 %vm947_vm1, %v2463_v33  ;;  %v887_v38 = vmul.f32 %v6677_v28, %v6680_v29  ;;  %v258_v30 = vadd.s32 136, %v6548_v34  ;;  %7845 = vst [vmem:[#allocation18_spill] sm:$0xff] %v6887_v51 }
  0x4e   : > { %5485 = vmatmul.mubr.msk.f32.gmra.mrb[24].mxu1 %vm947_vm1, %v2462_v32  ;;  %5685 = vmatmul.mubr.msk.f32.gmra.mrb[24].mxu0 %vm947_vm1, %v2464_v35  ;;  %v252_v32 = vadd.s32 88, %v6548_v34 }
  0x4f   : > { %5487 = vmatprep.mubr.msk.f32.mxu1 %vm947_vm1, %v2463_v33  ;;  %5687 = vmatprep.mubr.msk.f32.mxu0 %vm947_vm1, %v2465_v36 }
  0x50   : > { %v354_v44 = vand.u32 15, %v252_v32  ;;  %v259_v32 = vadd.s32 144, %v6548_v34 }
  0x52   : > { %5488 = vmatmul.mubr.msk.f32.gmra.mrb[26].mxu1 %vm947_vm1, %v2464_v35  ;;  %5688 = vmatmul.mubr.msk.f32.gmra.mrb[26].mxu0 %vm947_vm1, %v2466_v40  ;;  %v347_v35 = vand.u32 15, %v251_v18  ;;  %vm764_vm13 = vcmp.ne.s32.totalorder %v354_v44, 15  ;;  %v6827_v44 = vld [vmem:[%s6457_s17 + $0x7a] sm:$0xff]  ;;  %v403_v63 = vand.u32 15, %v259_v32 }
  0x53   : > { %5490 = vmatprep.mubr.msk.f32.mxu1 %vm947_vm1, %v2465_v36  ;;  %5690 = vmatprep.mubr.msk.f32.mxu0 %vm947_vm1, %v2467_v41  ;;  %v253_v36 = vadd.s32 96, %v6548_v34  ;;  %v6790_v15 = vsel %vm764_vm13, 1.0, %v7742_v48  ;;  %v6866_v32 = vld [vmem:[%s6457_s17 + $0x80] sm:$0xff] }
  0x54   : > { %vm667_vm12 = vcmp.ne.s32.totalorder %v347_v35, 0  ;;  %v2871_v33 = vmul.f32 %v6790_v15, %v6793_v16  ;;  %vm675_vm6 = vcmp.ne.s32.totalorder %v403_v63, 0  ;;  %v7843_v63 = vmov 0.0  }
  0x55   : > { %v6765_v61 = vsel %vm667_vm12, 1.0, %v7742_v48 }
  0x56   : > { %5491 = vmatmul.mubr.msk.f32.gmra.mrb[28].mxu1 %vm947_vm1, %v2466_v40  ;;  %5691 = vmatmul.mubr.msk.f32.gmra.mrb[28].mxu0 %vm947_vm1, %v2468_v46  ;;  %v6723_v40 = vld [vmem:[%s6457_s17 + $0x4a] sm:$0xff]  ;;  %v891_v14 = vmul.f32 %v6765_v61, %v6768_v62 }
  0x57   : > { %5493 = vmatprep.mubr.msk.f32.mxu1 %vm947_vm1, %v2467_v41  ;;  %5693 = vmatprep.mubr.msk.f32.mxu0 %vm947_vm1, %v2469_v47  ;;  %v6726_v41 = vld [vmem:[%s6457_s17 + $0x42] sm:$0xff]  ;;  %v255_v47 = vadd.s32 112, %v6548_v34  ;;  %v2867_v50 = vmul.f32 %v6720_v39, %v6723_v40 }
  0x59   : > { %v375_v1 = vand.u32 15, %v255_v47  ;;  %v6836_v47 = vld [vmem:[%s6457_s17 + $0x70] sm:$0xff] }
  0x5a   : > { %5494 = vmatmul.mubr.msk.f32.gmra.mrb[30].mxu1 %vm947_vm1, %v2468_v46  ;;  %5694 = vmatmul.mubr.msk.f32.gmra.mrb[30].mxu0 %vm947_vm1, %v2470_v55  ;;  %v361_v46 = vand.u32 15, %v253_v36  ;;  %v6759_v55 = vld [vmem:[%s6457_s17 + $0x5a] sm:$0xff] }
  0x5b   : > { %5498 = vmatprep.mubr.msk.f32.mxu1 %vm947_vm1, %v881_v56  ;;  %5698 = vmatprep.mubr.msk.f32.mxu0 %vm947_vm1, %v6592_v59  ;;  %v6762_v56 = vld [vmem:[%s6457_s17 + $0x52] sm:$0xff]  ;;  %vm671_vm2 = vcmp.ne.s32.totalorder %v375_v1, 0 }
  0x5c   : > { %vm669_vm14 = vcmp.ne.s32.totalorder %v361_v46, 0  ;;  %v6819_v36 = vld [vmem:[%s6457_s17 + $0x58] sm:$0xff]  ;;  %v6833_v46 = vsel %vm671_vm2, 1.0, %v7742_v48 }
  0x5d   : > { %v6799_v18 = vsel %vm669_vm14, 1.0, %v7742_v48 }
  0x5e   : > { %5499 = vmatmul.mubr.msk.f32.vlgmr.msra.gmra.mrb[0].mxu1 %vm947_vm1, %v850_v4  ;;  %5699 = vmatmul.mubr.msk.f32.vlgmr.msra.gmra.mrb[0].mxu0 %vm947_vm1, %v2861_v2  ;;  %v257_v2 = vadd.s32 128, %v6548_v34  ;;  %v2869_v4 = vmul.f32 %v6756_v54, %v6759_v55 }
  0x5f   : > { %5501 = vmatprep.mubr.msk.f32.mxu1 %vm947_vm1, %v883_v5  ;;  %5701 = vmatprep.mubr.msk.f32.mxu0 %vm947_vm1, %v6619_v8  ;;  %v6779_v5 = vmul.f32 %v6731_v42, %v6768_v62 }
  0x60   : > { %5747 = vmatpush3.msk.msra.mxu0 %vm1044_vm0, %v6471_v9  ;;  %5547 = vmatpush3.msk.msra.mxu1 %vm1044_vm0, %v6476_v10  ;;  %v2865_v9 = vmul.f32 %v6666_v25, %v6669_v26  ;;  %v6707_v10 = vmul.f32 %v6622_v11, %v6680_v29  ;;  %v389_v31 = vand.u32 15, %v257_v2  ;;  %v6849_v2 = vld [vmem:[%s6457_s17 + $0x68] sm:$0xff] }
  0x61   : > { %5796 = vmatprep.subr.msk.mxu0 %vm1044_vm0, %v6644_v20  ;;  %5596 = vmatprep.subr.msk.mxu1 %vm1044_vm0, %v6649_v21  ;;  %7836 = vst [vmem:[#allocation10_spill] sm:$0xff] %v6779_v5  ;;  %v263_v5 = vadd.s32 176, %v6548_v34 }
  0x62   : > { %5502 = vmatmul.mubr.msk.f32.gmra.mrb[2].mxu1 %vm947_vm1, %v6659_v23  ;;  %5702 = vmatmul.mubr.msk.f32.gmra.mrb[2].mxu0 %vm947_vm1, %v2863_v19  ;;  %7834 = vst [vmem:[#allocation8_spill] sm:$0xff] %v6707_v10  ;;  %v6802_v19 = vld [vmem:[%s6457_s17 + $0x60] sm:$0xff]  ;;  %vm673_vm4 = vcmp.ne.s32.totalorder %v389_v31, 0  ;;  %v6893_v10 = vsel %vm675_vm6, 1.0, %v7843_v63  ;;  %v264_v23 = vadd.s32 184, %v6548_v34 }
  0x63   : > { %5504 = vmatprep.mubr.msk.f32.mxu1 %vm947_vm1, %v885_v24  ;;  %5704 = vmatprep.mubr.msk.f32.mxu0 %vm947_vm1, %v6672_v27  ;;  %v382_v24 = vand.u32 15, %v256_v0  ;;  %v6813_v35 = vmul.f32 %v6765_v61, %v6802_v19  ;;  %v261_v0 = vadd.s32 160, %v6548_v34  ;;  %v6863_v31 = vsel %vm673_vm4, 1.0, %v7742_v48  ;;  %7847 = vst [vmem:[#allocation20_spill] sm:$0xff] %v6893_v10 }
  0x64   : > { %7842 = vst [vmem:[#allocation16_spill] sm:$0xff] %v6863_v31  ;;  %v431_v3 = vand.u32 15, %v263_v5 }
  0x65   : > { %7837 = vst [vmem:[#allocation11_spill] sm:$0xff] %v6813_v35  ;;  %vm768_vm3 = vcmp.ne.s32.totalorder %v382_v24, 15  ;;  %v6857_v24 = vld [vmem:[%s6457_s17 + $0x8a] sm:$0xff]  ;;  %v417_v35 = vand.u32 15, %v261_v0 }
  0x66   : > { %5505 = vmatmul.mubr.msk.f32.gmra.mrb[4].mxu1 %vm947_vm1, %v6713_v37  ;;  %5705 = vmatmul.mubr.msk.f32.gmra.mrb[4].mxu0 %vm947_vm1, %v2865_v9  ;;  %v893_v9 = vmul.f32 %v6799_v18, %v6802_v19  ;;  %7840 = vst [vmem:[#allocation14_spill] sm:$0xff] %v6857_v24  ;;  %vm679_vm10 = vcmp.ne.s32.totalorder %v431_v3, 0 }
  0x67   : > { %5507 = vmatprep.mubr.msk.f32.mxu1 %vm947_vm1, %v887_v38  ;;  %5707 = vmatprep.mubr.msk.f32.mxu0 %vm947_vm1, %v6726_v41  ;;  %v6824_v38 = vsel %vm766_vm15, 1.0, %v7742_v48  ;;  %vm677_vm8 = vcmp.ne.s32.totalorder %v417_v35, 0 }
  0x68   : > { %v2873_v1 = vmul.f32 %v6824_v38, %v6827_v44 }
  0x6a   : > { %5508 = vmatmul.mubr.msk.f32.gmra.mrb[6].mxu1 %vm947_vm1, %v6751_v52  ;;  %5708 = vmatmul.mubr.msk.f32.gmra.mrb[6].mxu0 %vm947_vm1, %v2867_v50  ;;  %v396_v50 = vand.u32 15, %v258_v30  ;;  %v6860_v30 = vld [vmem:[%s6457_s17 + $0x82] sm:$0xff] }
  0x6b   : > { %5510 = vmatprep.mubr.msk.f32.mxu1 %vm947_vm1, %v889_v53  ;;  %5710 = vmatprep.mubr.msk.f32.mxu0 %vm947_vm1, %v6762_v56  ;;  %v260_v53 = vadd.s32 152, %v6548_v34  ;;  %7841 = vst [vmem:[#allocation15_spill] sm:$0xff] %v6860_v30 }
  0x6c   : > { %vm770_vm5 = vcmp.ne.s32.totalorder %v396_v50, 15  ;;  %v6879_v50 = vld [vmem:[%s6457_s17 + $0x78] sm:$0xff] }
  0x6d   : > { %v6884_v0 = vsel %vm770_vm5, 1.0, %v7843_v63 }
  0x6e   : > { %5511 = vmatmul.mubr.msk.f32.gmra.mrb[8].mxu1 %vm947_vm1, %v6785_v13  ;;  %5711 = vmatmul.mubr.msk.f32.gmra.mrb[8].mxu0 %vm947_vm1, %v2869_v4  ;;  %v895_v4 = vmul.f32 %v6833_v46, %v6836_v47  ;;  %7844 = vst [vmem:[#allocation17_spill] sm:$0xff] %v6884_v0 }
  0x6f   : > { %5513 = vmatprep.mubr.msk.f32.mxu1 %vm947_vm1, %v891_v14  ;;  %5713 = vmatprep.mubr.msk.f32.mxu0 %vm947_vm1, %v6796_v17  ;;  %v6854_v14 = vsel %vm768_vm3, 1.0, %v7742_v48 }
  0x70   : > { %7839 = vst [vmem:[#allocation13_spill] sm:$0xff] %v6854_v14  ;;  %v2875_v48 = vmul.f32 %v6854_v14, %v6857_v24  ;;  %v2877_v24 = vmul.f32 %v6884_v0, %v6887_v51  ;;  %v6923_v51 = vsel %vm677_vm8, 1.0, %v7843_v63 }
  0x71   : > { %7851 = vst [vmem:[#allocation24_spill] sm:$0xff] %v6923_v51 }
  0x72   : > { %5514 = vmatmul.mubr.msk.f32.gmra.mrb[10].mxu1 %vm947_vm1, %v6819_v36  ;;  %5714 = vmatmul.mubr.msk.f32.gmra.mrb[10].mxu0 %vm947_vm1, %v2871_v33  ;;  %v410_v33 = vand.u32 15, %v260_v53  ;;  %v897_v53 = vmul.f32 %v6863_v31, %v6866_v32  ;;  %v267_v31 = vadd.s32 208, %v6548_v34 }
  0x73   : > { %5516 = vmatprep.mubr.msk.f32.mxu1 %vm947_vm1, %v893_v9  ;;  %5716 = vmatprep.mubr.msk.f32.mxu0 %vm947_vm1, %v6830_v45  ;;  %v262_v9 = vadd.s32 168, %v6548_v34 }
  0x74   : > { %vm772_vm7 = vcmp.ne.s32.totalorder %v410_v33, 15  ;;  %v6909_v33 = vld [vmem:[%s6457_s17 + $0x88] sm:$0xff] }
  0x75   : > { %v424_v22 = vand.u32 15, %v262_v9  ;;  %v6914_v35 = vsel %vm772_vm7, 1.0, %v7843_v63  ;;  %v6917_v9 = vld [vmem:[%s6457_s17 + $0xaa] sm:$0xff] }
  0x76   : > { %5517 = vmatmul.mubr.msk.f32.gmra.mrb[12].mxu1 %vm947_vm1, %v6849_v2  ;;  %5717 = vmatmul.mubr.msk.f32.gmra.mrb[12].mxu0 %vm947_vm1, %v2873_v1  ;;  %v6890_v1 = vld [vmem:[%s6457_s17 + $0x92] sm:$0xff]  ;;  %7848 = vst [vmem:[#allocation21_spill] sm:$0xff] %v6914_v35  ;;  %7849 = vst [vmem:[#allocation22_spill] sm:$0xff] %v6917_v9  ;;  %v2879_v45 = vmul.f32 %v6914_v35, %v6917_v9  ;;  %v6953_v9 = vsel %vm679_vm10, 1.0, %v7843_v63  ;;  %v459_v35 = vand.u32 15, %v267_v31 }
  0x77   : > { %5519 = vmatprep.mubr.msk.f32.mxu1 %vm947_vm1, %v895_v4  ;;  %5719 = vmatprep.mubr.msk.f32.mxu0 %vm947_vm1, %v6860_v30  ;;  %7846 = vst [vmem:[#allocation19_spill] sm:$0xff] %v6890_v1  ;;  %v6896_v4 = vld [vmem:[%s6457_s17 + $0x90] sm:$0xff]  ;;  %v265_v30 = vadd.s32 192, %v6548_v34  ;;  %vm774_vm9 = vcmp.ne.s32.totalorder %v424_v22, 15  ;;  %v6939_v22 = vld [vmem:[%s6457_s17 + $0x98] sm:$0xff]  ;;  %7857 = vst [vmem:[#allocation30_spill] sm:$0xff] %v6953_v9 }
  0x78   : > { %v899_v5 = vmul.f32 %v6893_v10, %v6896_v4  ;;  %v266_v10 = vadd.s32 200, %v6548_v34  ;;  %7853 = vst [vmem:[#allocation26_spill] sm:$0xff] %v6939_v22  ;;  %vm683_vm14 = vcmp.ne.s32.totalorder %v459_v35, 0 }
  0x79   : > { %v445_v0 = vand.u32 15, %v265_v30  ;;  %v6947_v30 = vld [vmem:[%s6457_s17 + $0xba] sm:$0xff] }
  0x7a   : > { %5520 = vmatmul.mubr.msk.f32.gmra.mrb[14].mxu1 %vm947_vm1, %v6879_v50  ;;  %5720 = vmatmul.mubr.msk.f32.gmra.mrb[14].mxu0 %vm947_vm1, %v2875_v48  ;;  %v6920_v48 = vld [vmem:[%s6457_s17 + $0xa2] sm:$0xff]  ;;  %7855 = vst [vmem:[#allocation28_spill] sm:$0xff] %v6947_v30 }
  0x7b   : > { %5522 = vmatprep.mubr.msk.f32.mxu1 %vm947_vm1, %v897_v53  ;;  %5722 = vmatprep.mubr.msk.f32.mxu0 %vm947_vm1, %v6890_v1  ;;  %7850 = vst [vmem:[#allocation23_spill] sm:$0xff] %v6920_v48  ;;  %v6926_v53 = vld [vmem:[%s6457_s17 + $0xa0] sm:$0xff]  ;;  %v438_v1 = vand.u32 15, %v264_v23  ;;  %v6944_v23 = vsel %vm774_vm9, 1.0, %v7843_v63  ;;  %vm681_vm12 = vcmp.ne.s32.totalorder %v445_v0, 0 }
  0x7c   : > { %7852 = vst [vmem:[#allocation25_spill] sm:$0xff] %v6926_v53  ;;  %v901_v3 = vmul.f32 %v6923_v51, %v6926_v53  ;;  %7854 = vst [vmem:[#allocation27_spill] sm:$0xff] %v6944_v23  ;;  %v268_v51 = vadd.s32 216, %v6548_v34  ;;  %v269_v53 = vadd.s32 224, %v6548_v34  ;;  %v2881_v14 = vmul.f32 %v6944_v23, %v6947_v30 }
  0x7d   : > { %vm776_vm11 = vcmp.ne.s32.totalorder %v438_v1, 15  ;;  %v6977_v1 = vld [vmem:[%s6457_s17 + $0xca] sm:$0xff]  ;;  %v6983_v30 = vsel %vm681_vm12, 1.0, %v7843_v63 }
  0x7e   : > { %5523 = vmatmul.mubr.msk.f32.gmra.mrb[16].mxu1 %vm947_vm1, %v6909_v33  ;;  %5723 = vmatmul.mubr.msk.f32.gmra.mrb[16].mxu0 %vm947_vm1, %v2877_v24  ;;  %v6950_v24 = vld [vmem:[%s6457_s17 + $0xb2] sm:$0xff]  ;;  %v6974_v0 = vsel %vm776_vm11, 1.0, %v7843_v63  ;;  %7860 = vst [vmem:[#allocation33_spill] sm:$0xff] %v6977_v1  ;;  %7862 = vst [vmem:[#allocation35_spill] sm:$0xff] %v6983_v30  ;;  %v473_v23 = vand.u32 15, %v269_v53  ;;  %v7007_v53 = vld [vmem:[%s6457_s17 + $0xda] sm:$0xff] }
  0x7f   : > { %5525 = vmatprep.mubr.msk.f32.mxu1 %vm947_vm1, %v899_v5  ;;  %5725 = vmatprep.mubr.msk.f32.mxu0 %vm947_vm1, %v6920_v48  ;;  %7856 = vst [vmem:[#allocation29_spill] sm:$0xff] %v6950_v24  ;;  %v6956_v5 = vld [vmem:[%s6457_s17 + $0xb0] sm:$0xff]  ;;  %v452_v48 = vand.u32 15, %v266_v10  ;;  %v6969_v10 = vld [vmem:[%s6457_s17 + $0xa8] sm:$0xff]  ;;  %7859 = vst [vmem:[#allocation32_spill] sm:$0xff] %v6974_v0 }
  0x80   : > { %7858 = vst [vmem:[#allocation31_spill] sm:$0xff] %v6956_v5  ;;  %v903_v31 = vmul.f32 %v6953_v9, %v6956_v5  ;;  %v270_v9 = vadd.s32 232, %v6548_v34  ;;  %v271_v5 = vadd.s32 240, %v6548_v34  ;;  %7865 = vst [vmem:[#allocation38_spill] sm:$0xff] %v7007_v53  ;;  %vm685_vm2 = vcmp.ne.s32.totalorder %v473_v23, 0  ;;  %v7036_v23 = vld [vmem:[%s6457_s17 + $0xea] sm:$0xff] }
  0x81   : > { %vm778_vm13 = vcmp.ne.s32.totalorder %v452_v48, 15  ;;  %7869 = vst [vmem:[#allocation42_spill] sm:$0xff] %v7036_v23 }
  0x82   : > { %5526 = vmatmul.mubr.msk.f32.gmra.mrb[18].mxu1 %vm947_vm1, %v6939_v22  ;;  %5726 = vmatmul.mubr.msk.f32.gmra.mrb[18].mxu0 %vm947_vm1, %v2879_v45  ;;  %v6980_v45 = vld [vmem:[%s6457_s17 + $0xc2] sm:$0xff]  ;;  %v2883_v22 = vmul.f32 %v6974_v0, %v6977_v1  ;;  %v7004_v48 = vsel %vm778_vm13, 1.0, %v7843_v63  ;;  %v7013_v1 = vsel %vm683_vm14, 1.0, %v7843_v63  ;;  %v487_v0 = vand.u32 15, %v271_v5 }
  0x83   : > { %5528 = vmatprep.mubr.msk.f32.mxu1 %vm947_vm1, %v901_v3  ;;  %5728 = vmatprep.mubr.msk.f32.mxu0 %vm947_vm1, %v6950_v24  ;;  %7861 = vst [vmem:[#allocation34_spill] sm:$0xff] %v6980_v45  ;;  %v6986_v3 = vld [vmem:[%s6457_s17 + $0xc0] sm:$0xff]  ;;  %v466_v24 = vand.u32 15, %v268_v51  ;;  %v6999_v51 = vld [vmem:[%s6457_s17 + $0xb8] sm:$0xff]  ;;  %7864 = vst [vmem:[#allocation37_spill] sm:$0xff] %v7004_v48  ;;  %v7042_v5 = vsel %vm685_vm2, 1.0, %v7843_v63 }
  0x84   : > { %7863 = vst [vmem:[#allocation36_spill] sm:$0xff] %v6986_v3  ;;  %v905_v35 = vmul.f32 %v6983_v30, %v6986_v3  ;;  %7867 = vst [vmem:[#allocation40_spill] sm:$0xff] %v7013_v1  ;;  %v272_v30 = vadd.s32 248, %v6548_v34  ;;  %v2885_v3 = vmul.f32 %v7004_v48, %v7007_v53  ;;  %vm687_vm4 = vcmp.ne.s32.totalorder %v487_v0, 0  ;;  %v7092_v48 = vld [vmem:[%s6457_s17 + $0x10a] sm:$0xff] }
  0x85   : > { %vm780_vm15 = vcmp.ne.s32.totalorder %v466_v24, 15  ;;  %v7028_v24 = vld [vmem:[%s6457_s17 + $0xc8] sm:$0xff]  ;;  %7871 = vst [vmem:[#allocation44_spill] sm:$0xff] %v7042_v5  ;;  %7877 = vst [vmem:[#allocation50_spill] sm:$0xff] %v7092_v48 }
  0x86   : > { %5529 = vmatmul.mubr.msk.f32.gmra.mrb[20].mxu1 %vm947_vm1, %v6969_v10  ;;  %5729 = vmatmul.mubr.msk.f32.gmra.mrb[20].mxu0 %vm947_vm1, %v2881_v14  ;;  %v7010_v14 = vld [vmem:[%s6457_s17 + $0xd2] sm:$0xff] }
  0x87   : > { %5531 = vmatprep.mubr.msk.f32.mxu1 %vm947_vm1, %v903_v31  ;;  %5731 = vmatprep.mubr.msk.f32.mxu0 %vm947_vm1, %v6980_v45  ;;  %7866 = vst [vmem:[#allocation39_spill] sm:$0xff] %v7010_v14  ;;  %v7016_v31 = vld [vmem:[%s6457_s17 + $0xd0] sm:$0xff]  ;;  %v480_v45 = vand.u32 15, %v270_v9  ;;  %v7033_v9 = vsel %vm780_vm15, 1.0, %v7843_v63 }
  0x88   : > { %v907_v34 = vmul.f32 %v7013_v1, %v7016_v31  ;;  %7868 = vst [vmem:[#allocation41_spill] sm:$0xff] %v7033_v9  ;;  %v2887_v53 = vmul.f32 %v7033_v9, %v7036_v23  ;;  %v7056_v1 = vld [vmem:[%s6457_s17 + $0xd8] sm:$0xff]  ;;  %v7070_v23 = vsel %vm687_vm4, 1.0, %v7843_v63 }
  0x89   : > { %vm782_vm3 = vcmp.ne.s32.totalorder %v480_v45, 15  ;;  %v7064_v45 = vld [vmem:[%s6457_s17 + $0xfa] sm:$0xff]  ;;  %7875 = vst [vmem:[#allocation48_spill] sm:$0xff] %v7070_v23 }
  0x8a   : > { %5532 = vmatmul.mubr.msk.f32.gmra.mrb[22].mxu1 %vm947_vm1, %v6999_v51  ;;  %5732 = vmatmul.mubr.msk.f32.gmra.mrb[22].mxu0 %vm947_vm1, %v2883_v22  ;;  %v7039_v22 = vld [vmem:[%s6457_s17 + $0xe2] sm:$0xff]  ;;  %v7061_v0 = vsel %vm782_vm3, 1.0, %v7843_v63  ;;  %7873 = vst [vmem:[#allocation46_spill] sm:$0xff] %v7064_v45 }
  0x8b   : > { %5534 = vmatprep.mubr.msk.f32.mxu1 %vm947_vm1, %v905_v35  ;;  %5734 = vmatprep.mubr.msk.f32.mxu0 %vm947_vm1, %v7010_v14  ;;  %7870 = vst [vmem:[#allocation43_spill] sm:$0xff] %v7039_v22  ;;  %v7045_v35 = vld [vmem:[%s6457_s17 + $0xe0] sm:$0xff]  ;;  %v494_v14 = vand.u32 15, %v272_v30  ;;  %7872 = vst [vmem:[#allocation45_spill] sm:$0xff] %v7061_v0 }
  0x8c   : > { %v909_v30 = vmul.f32 %v7042_v5, %v7045_v35  ;;  %v7084_v5 = vld [vmem:[%s6457_s17 + $0xe8] sm:$0xff] }
  0x8d   : > { %vm784_vm5 = vcmp.ne.s32.totalorder %v494_v14, 15 }
  0x8e   : > { %5535 = vmatmul.mubr.msk.f32.gmra.mrb[24].mxu1 %vm947_vm1, %v7028_v24  ;;  %5735 = vmatmul.mubr.msk.f32.gmra.mrb[24].mxu0 %vm947_vm1, %v2885_v3  ;;  %v7067_v3 = vld [vmem:[%s6457_s17 + $0xf2] sm:$0xff]  ;;  %v7089_v9 = vsel %vm784_vm5, 1.0, %v7843_v63  ;;  %v3281_v63 = vmul.f32 %v6574_v49, %v6625_v12  ;;  %v1632_v49 = vmul.f32 %v6613_v6, %v6589_v58  ;;  %v7128_v12 = vld [vmem:[%s7737_s1 + $0x20] sm:$0xf]  ;;  %v1634_v58 = vmul.f32 %v6666_v25, %v6616_v7 }
  0x8f   : > { %5537 = vmatprep.mubr.msk.f32.mxu1 %vm947_vm1, %v907_v34  ;;  %5737 = vmatprep.mubr.msk.f32.mxu0 %vm947_vm1, %v7039_v22  ;;  %7874 = vst [vmem:[#allocation47_spill] sm:$0xff] %v7067_v3  ;;  %v7073_v34 = vld [vmem:[%s6457_s17 + $0xf0] sm:$0xff]  ;;  %v2889_v22 = vmul.f32 %v7061_v0, %v7064_v45  ;;  %7876 = vst [vmem:[#allocation49_spill] sm:$0xff] %v7089_v9  ;;  %v3289_v7 = vmul.f32 %v6731_v42, %v6802_v19  ;;  %v7881_v42 = vld [vmem:[#allocation25_spill] sm:$0xff] }
  0x90   : > { %v911_v14 = vmul.f32 %v7070_v23, %v7073_v34  ;;  %v1598_v45 = vld [vmem:[%s6457_s17 + $0xa] sm:$0xff]  ;;  %v1597_v23 = vld [vmem:[%s6457_s17 + $0x2] sm:$0xff]  ;;  %v7887_v19 = vld [vmem:[#allocation31_spill] sm:$0xff] }
  0x92   : > { %5538 = vmatmul.mubr.msk.f32.gmra.mrb[26].mxu1 %vm947_vm1, %v7056_v1  ;;  %5738 = vmatmul.mubr.msk.f32.gmra.mrb[26].mxu0 %vm947_vm1, %v2887_v53  ;;  %v7095_v53 = vld [vmem:[%s6457_s17 + $0x102] sm:$0xff] }
  0x93   : > { %5540 = vmatprep.mubr.msk.f32.mxu1 %vm947_vm1, %v909_v30  ;;  %5740 = vmatprep.mubr.msk.f32.mxu0 %vm947_vm1, %v7067_v3  ;;  %7878 = vst [vmem:[#allocation51_spill] sm:$0xff] %v7095_v53  ;;  %v2891_v30 = vmul.f32 %v7089_v9, %v7092_v48  ;;  %v7106_v3 = vld [vmem:[%s6457_s17 + $0xf8] sm:$0xff]  ;;  %v7907_v48 = vld [vmem:[#allocation41_spill] sm:$0xff] }
  0x96   : > { %5541 = vmatmul.mubr.msk.f32.gmra.mrb[28].mxu1 %vm947_vm1, %v7084_v5  ;;  %5741 = vmatmul.mubr.msk.f32.gmra.mrb[28].mxu0 %vm947_vm1, %v2889_v22  ;;  %v1630_v22 = vmul.f32 %v6586_v57, %v1598_v45  ;;  %v7889_v45 = vld [vmem:[#allocation18_spill] sm:$0xff] }
  0x97   : > { %5543 = vmatprep.mubr.msk.f32.mxu1 %vm947_vm1, %v911_v14  ;;  %5743 = vmatprep.mubr.msk.f32.mxu0 %vm947_vm1, %v7095_v53  ;;  %v3283_v14 = vmul.f32 %v6595_v60, %v6680_v29  ;;  %v3285_v60 = vmul.f32 %v6622_v11, %v6734_v43  ;;  %v1636_v11 = vmul.f32 %v6720_v39, %v6669_v26  ;;  %v7879_v29 = vld [vmem:[#allocation13_spill] sm:$0xff]  ;;  %v7882_v43 = vld [vmem:[#allocation16_spill] sm:$0xff] }
  0x98   : > { %v3293_v26 = vmul.f32 %v6799_v18, %v6866_v32  ;;  %v7252_v53 = vld [vmem:[%s6457_s17 + $0x100] sm:$0xff] }
  0x9a   : > { %5544 = vmatmul.mubr.msk.f32.gmra.mrb[30].mxu1 %vm947_vm1, %v7106_v3  ;;  %5744 = vmatmul.mubr.msk.f32.gmra.mrb[30].mxu0 %vm947_vm1, %v2891_v30  ;;  %v7890_v30 = vld [vmem:[#allocation21_spill] sm:$0xff] }
  0x9b   : > { %5548 = vmatprep.mubr.msk.f32.mxu1 %vm947_vm1, %v1597_v23  ;;  %5748 = vmatprep.mubr.msk.f32.mxu0 %vm947_vm1, %v3281_v63  ;;  %v7888_v63 = vld [vmem:[#allocation20_spill] sm:$0xff] }
  0x9c   : > { %v3299_v23 = vmul.f32 %v7888_v63, %v7887_v19 }
  0x9e   : > { %5549 = vmatmul.mubr.msk.f32.vlgmr.msra.gmra.mrb[0].mxu1 %vm947_vm1, %v1630_v22  ;;  %5749 = vmatmul.mubr.msk.f32.vlgmr.msra.gmra.mrb[0].mxu0 %vm947_vm1, %v6713_v37  ;;  %v1648_v22 = vmul.f32 %v7890_v30, %v7889_v45 }
  0x9f   : > { %5551 = vmatprep.mubr.msk.f32.mxu1 %vm947_vm1, %v6592_v59  ;;  %5751 = vmatprep.mubr.msk.f32.mxu0 %vm947_vm1, %v3283_v14  ;;  %v3287_v59 = vmul.f32 %v6677_v28, %v6768_v62  ;;  %v3295_v28 = vmul.f32 %v6833_v46, %v6896_v4  ;;  %v7885_v62 = vld [vmem:[#allocation17_spill] sm:$0xff]  ;;  %v7891_v14 = vld [vmem:[#allocation19_spill] sm:$0xff] }
  0xa0   : > { %5797 = vmatpush3.msk.msra.mxu0 %vm1044_vm0, %v6644_v20  ;;  %5597 = vmatpush3.msk.msra.mxu1 %vm1044_vm0, %v6649_v21  ;;  %v3291_v20 = vmul.f32 %v6765_v61, %v6836_v47  ;;  %v1640_v21 = vmul.f32 %v6790_v15, %v6759_v55  ;;  %v3297_v55 = vmul.f32 %v7882_v43, %v7881_v42  ;;  %v7884_v61 = vld [vmem:[#allocation14_spill] sm:$0xff] }
  0xa1   : > { %5846 = vmatprep.subr.msk.mxu0 %vm1044_vm0, %v7128_v12 }
  0xa2   : > { %5552 = vmatmul.mubr.msk.f32.gmra.mrb[2].mxu1 %vm947_vm1, %v1632_v49  ;;  %5752 = vmatmul.mubr.msk.f32.gmra.mrb[2].mxu0 %vm947_vm1, %v6751_v52  ;;  %v7892_v49 = vld [vmem:[#allocation36_spill] sm:$0xff] }
  0xa3   : > { %5554 = vmatprep.mubr.msk.f32.mxu1 %vm947_vm1, %v6619_v8  ;;  %5754 = vmatprep.mubr.msk.f32.mxu0 %vm947_vm1, %v3285_v60  ;;  %v1638_v8 = vmul.f32 %v6756_v54, %v6723_v40  ;;  %v1644_v40 = vmul.f32 %v7879_v29, %v6827_v44  ;;  %v7893_v60 = vld [vmem:[#allocation24_spill] sm:$0xff] }
  0xa6   : > { %5555 = vmatmul.mubr.msk.f32.gmra.mrb[4].mxu1 %vm947_vm1, %v1634_v58  ;;  %5755 = vmatmul.mubr.msk.f32.gmra.mrb[4].mxu0 %vm947_vm1, %v6785_v13  ;;  %v3301_v58 = vmul.f32 %v7893_v60, %v7892_v49 }
  0xa7   : > { %5557 = vmatprep.mubr.msk.f32.mxu1 %vm947_vm1, %v6672_v27  ;;  %5757 = vmatprep.mubr.msk.f32.mxu0 %vm947_vm1, %v3287_v59  ;;  %v1642_v27 = vmul.f32 %v6824_v38, %v6793_v16  ;;  %v1646_v16 = vmul.f32 %v7885_v62, %v7884_v61  ;;  %v7894_v59 = vld [vmem:[#allocation22_spill] sm:$0xff] }
  0xaa   : > { %5558 = vmatmul.mubr.msk.f32.gmra.mrb[6].mxu1 %vm947_vm1, %v1636_v11  ;;  %5758 = vmatmul.mubr.msk.f32.gmra.mrb[6].mxu0 %vm947_vm1, %v6819_v36  ;;  %v7895_v11 = vld [vmem:[#allocation27_spill] sm:$0xff] }
  0xab   : > { %5560 = vmatprep.mubr.msk.f32.mxu1 %vm947_vm1, %v6726_v41  ;;  %5760 = vmatprep.mubr.msk.f32.mxu0 %vm947_vm1, %v3289_v7  ;;  %v7880_v41 = vld [vmem:[#allocation12_spill] sm:$0xff]  ;;  %v1650_v7 = vmul.f32 %v7895_v11, %v7894_v59  ;;  %v3279_v11 = vld [vmem:[%s6457_s17 + $0x110] sm:$0xff] }
  0xae   : > { %5561 = vmatmul.mubr.msk.f32.gmra.mrb[8].mxu1 %vm947_vm1, %v1638_v8  ;;  %5761 = vmatmul.mubr.msk.f32.gmra.mrb[8].mxu0 %vm947_vm1, %v6849_v2  ;;  %v7896_v8 = vld [vmem:[#allocation23_spill] sm:$0xff] }
  0xaf   : > { %5563 = vmatprep.mubr.msk.f32.mxu1 %vm947_vm1, %v6762_v56  ;;  %5763 = vmatprep.mubr.msk.f32.mxu0 %vm947_vm1, %v3291_v20  ;;  %v7883_v56 = vld [vmem:[#allocation26_spill] sm:$0xff] }
  0xb0   : > { %v7897_v20 = vld [vmem:[#allocation30_spill] sm:$0xff] }
  0xb2   : > { %5564 = vmatmul.mubr.msk.f32.gmra.mrb[10].mxu1 %vm947_vm1, %v1640_v21  ;;  %5764 = vmatmul.mubr.msk.f32.gmra.mrb[10].mxu0 %vm947_vm1, %v6879_v50  ;;  %v3303_v21 = vmul.f32 %v7897_v20, %v7016_v31 }
  0xb3   : > { %5566 = vmatprep.mubr.msk.f32.mxu1 %vm947_vm1, %v6796_v17  ;;  %5766 = vmatprep.mubr.msk.f32.mxu0 %vm947_vm1, %v3293_v26  ;;  %v7886_v17 = vld [vmem:[#allocation15_spill] sm:$0xff]  ;;  %v7898_v26 = vld [vmem:[#allocation28_spill] sm:$0xff] }
  0xb6   : > { %5567 = vmatmul.mubr.msk.f32.gmra.mrb[12].mxu1 %vm947_vm1, %v1642_v27  ;;  %5767 = vmatmul.mubr.msk.f32.gmra.mrb[12].mxu0 %vm947_vm1, %v6909_v33  ;;  %v7899_v27 = vld [vmem:[#allocation32_spill] sm:$0xff] }
  0xb7   : > { %5569 = vmatprep.mubr.msk.f32.mxu1 %vm947_vm1, %v7880_v41  ;;  %5769 = vmatprep.mubr.msk.f32.mxu0 %vm947_vm1, %v3295_v28  ;;  %v1652_v28 = vmul.f32 %v7899_v27, %v7898_v26  ;;  %v7901_v41 = vld [vmem:[#allocation35_spill] sm:$0xff] }
  0xba   : > { %5570 = vmatmul.mubr.msk.f32.gmra.mrb[14].mxu1 %vm947_vm1, %v1644_v40  ;;  %5770 = vmatmul.mubr.msk.f32.gmra.mrb[14].mxu0 %vm947_vm1, %v7883_v56  ;;  %v7900_v40 = vld [vmem:[#allocation29_spill] sm:$0xff] }
  0xbb   : > { %5572 = vmatprep.mubr.msk.f32.mxu1 %vm947_vm1, %v7886_v17  ;;  %5772 = vmatprep.mubr.msk.f32.mxu0 %vm947_vm1, %v3297_v55  ;;  %v3305_v55 = vmul.f32 %v7901_v41, %v7045_v35 }
  0xbe   : > { %5573 = vmatmul.mubr.msk.f32.gmra.mrb[16].mxu1 %vm947_vm1, %v1646_v16  ;;  %5773 = vmatmul.mubr.msk.f32.gmra.mrb[16].mxu0 %vm947_vm1, %v6969_v10  ;;  %v7902_v16 = vld [vmem:[#allocation33_spill] sm:$0xff] }
  0xbf   : > { %5575 = vmatprep.mubr.msk.f32.mxu1 %vm947_vm1, %v7891_v14  ;;  %5775 = vmatprep.mubr.msk.f32.mxu0 %vm947_vm1, %v3299_v23  ;;  %v7903_v23 = vld [vmem:[#allocation37_spill] sm:$0xff] }
  0xc2   : > { %5576 = vmatmul.mubr.msk.f32.gmra.mrb[18].mxu1 %vm947_vm1, %v1648_v22  ;;  %5776 = vmatmul.mubr.msk.f32.gmra.mrb[18].mxu0 %vm947_vm1, %v6999_v51  ;;  %v1654_v22 = vmul.f32 %v7903_v23, %v7902_v16  ;;  %v7908_v23 = vld [vmem:[#allocation39_spill] sm:$0xff] }
  0xc3   : > { %5578 = vmatprep.mubr.msk.f32.mxu1 %vm947_vm1, %v7896_v8  ;;  %5778 = vmatprep.mubr.msk.f32.mxu0 %vm947_vm1, %v3301_v58  ;;  %v7904_v58 = vld [vmem:[#allocation34_spill] sm:$0xff] }
  0xc6   : > { %5579 = vmatmul.mubr.msk.f32.gmra.mrb[20].mxu1 %vm947_vm1, %v1650_v7  ;;  %5779 = vmatmul.mubr.msk.f32.gmra.mrb[20].mxu0 %vm947_vm1, %v7028_v24  ;;  %v7905_v7 = vld [vmem:[#allocation40_spill] sm:$0xff] }
  0xc7   : > { %5581 = vmatprep.mubr.msk.f32.mxu1 %vm947_vm1, %v7900_v40  ;;  %5781 = vmatprep.mubr.msk.f32.mxu0 %vm947_vm1, %v3303_v21  ;;  %v3307_v21 = vmul.f32 %v7905_v7, %v7073_v34 }
  0xca   : > { %5582 = vmatmul.mubr.msk.f32.gmra.mrb[22].mxu1 %vm947_vm1, %v1652_v28  ;;  %5782 = vmatmul.mubr.msk.f32.gmra.mrb[22].mxu0 %vm947_vm1, %v7056_v1  ;;  %v7906_v28 = vld [vmem:[#allocation38_spill] sm:$0xff] }
  0xcb   : > { %5584 = vmatprep.mubr.msk.f32.mxu1 %vm947_vm1, %v7904_v58  ;;  %5784 = vmatprep.mubr.msk.f32.mxu0 %vm947_vm1, %v3305_v55  ;;  %v1656_v27 = vmul.f32 %v7907_v48, %v7906_v28  ;;  %v7909_v55 = vld [vmem:[#allocation44_spill] sm:$0xff]  ;;  %v7911_v48 = vld [vmem:[#allocation43_spill] sm:$0xff] }
  0xcc   : > { %v3309_v58 = vmul.f32 %v7909_v55, %v7252_v53 }
  0xce   : > { %5585 = vmatmul.mubr.msk.f32.gmra.mrb[24].mxu1 %vm947_vm1, %v1654_v22  ;;  %5785 = vmatmul.mubr.msk.f32.gmra.mrb[24].mxu0 %vm947_vm1, %v7084_v5  ;;  %v7910_v22 = vld [vmem:[#allocation42_spill] sm:$0xff] }
  0xcf   : > { %5587 = vmatprep.mubr.msk.f32.mxu1 %vm947_vm1, %v7908_v23  ;;  %5787 = vmatprep.mubr.msk.f32.mxu0 %vm947_vm1, %v3307_v21  ;;  %v1658_v16 = vmul.f32 %v7061_v0, %v7910_v22  ;;  %v7274_v21 = vld [vmem:[%s6457_s17 + $0x108] sm:$0xff]  ;;  %v7912_v23 = vld [vmem:[#allocation48_spill] sm:$0xff]  ;;  %v7914_v22 = vld [vmem:[#allocation47_spill] sm:$0xff] }
  0xd0   : > { %v3311_v28 = vmul.f32 %v7912_v23, %v3279_v11  ;;  %v7915_v11 = vld [vmem:[#allocation5_spill] sm:$0xff] }
  0xd2   : > { %5588 = vmatmul.mubr.msk.f32.gmra.mrb[26].mxu1 %vm947_vm1, %v1656_v27  ;;  %5788 = vmatmul.mubr.msk.f32.gmra.mrb[26].mxu0 %vm947_vm1, %v7106_v3  ;;  %v7913_v27 = vld [vmem:[#allocation46_spill] sm:$0xff] }
  0xd3   : > { %5590 = vmatprep.mubr.msk.f32.mxu1 %vm947_vm1, %v7911_v48  ;;  %5790 = vmatprep.mubr.msk.f32.mxu0 %vm947_vm1, %v3309_v58  ;;  %v1660_v0 = vmul.f32 %v7089_v9, %v7913_v27  ;;  %v3280_v58 = vld [vmem:[%s6457_s17 + $0x118] sm:$0xff]  ;;  %v3670_v48 = vld [vmem:[%s6457_s17 + $0x21] sm:$0xff] }
  0xd4   : > { %v3672_v9 = vld [vmem:[%s6457_s17 + $0x31] sm:$0xff] }
  0xd5   : > { %v7916_v27 = vld [vmem:[#allocation7_spill] sm:$0xff] }
  0xd6   : > { %5591 = vmatmul.mubr.msk.f32.gmra.mrb[28].mxu1 %vm947_vm1, %v1658_v16  ;;  %5791 = vmatmul.mubr.msk.f32.gmra.mrb[28].mxu0 %vm947_vm1, %v7274_v21  ;;  %v3671_v16 = vld [vmem:[%s6457_s17 + $0x29] sm:$0xff] }
  0xd7   : > { %5593 = vmatprep.mubr.msk.f32.mxu1 %vm947_vm1, %v7914_v22  ;;  %5793 = vmatprep.mubr.msk.f32.mxu0 %vm947_vm1, %v3311_v28  ;;  %v7917_v28 = vld [vmem:[#allocation6_spill] sm:$0xff] }
  0xda   : > { %5594 = vmatmul.mubr.msk.f32.gmra.mrb[30].mxu1 %vm947_vm1, %v1660_v0  ;;  %5794 = vmatmul.mubr.msk.f32.gmra.mrb[30].mxu0 %vm947_vm1, %v3280_v58  ;;  %v3673_v0 = vld [vmem:[%s6457_s17 + $0x39] sm:$0xff]  ;;  %v3674_v58 = vld [vmem:[%s6457_s17 + $0x41] sm:$0xff] }
  0xdb   : > { %5598 = vmatprep.mubr.msk.f32.mxu1 %vm947_vm1, %v7915_v11  ;;  %5798 = vmatprep.mubr.msk.f32.mxu0 %vm947_vm1, %v3670_v48  ;;  %v7918_v48 = vld [vmem:[#allocation8_spill] sm:$0xff]  ;;  %v3676_v11 = vld [vmem:[%s6457_s17 + $0x51] sm:$0xff] }
  0xde   : > { %5599 = vmatmul.mubr.msk.f32.vlgmr.msra.gmra.mrb[0].mxu1 %vm947_vm1, %v7916_v27  ;;  %5799 = vmatmul.mubr.msk.f32.vlgmr.msra.gmra.mrb[0].mxu0 %vm947_vm1, %v3671_v16  ;;  %v3675_v27 = vld [vmem:[%s6457_s17 + $0x49] sm:$0xff] }
  0xdf   : > { %5601 = vmatprep.mubr.msk.f32.mxu1 %vm947_vm1, %v7917_v28  ;;  %5801 = vmatprep.mubr.msk.f32.mxu0 %vm947_vm1, %v3672_v9  ;;  %v7919_v9 = vld [vmem:[#allocation9_spill] sm:$0xff]  ;;  %v7920_v16 = vld [vmem:[#allocation10_spill] sm:$0xff] }
  0xe0   : > { %5847 = vmatpush3.msk.msra.mxu0 %vm1044_vm0, %v7128_v12  ;;  %v3678_v12 = vld [vmem:[%s6457_s17 + $0x61] sm:$0xff]  ;;  %v3680_v28 = vld [vmem:[%s6457_s17 + $0x71] sm:$0xff]  ;;  %vm6354_vm0 = vmmov 0  }
  0xe2   : > { %5602 = vmatmul.mubr.msk.f32.gmra.mrb[2].mxu1 %vm947_vm1, %v6713_v37  ;;  %5802 = vmatmul.mubr.msk.f32.gmra.mrb[2].mxu0 %vm947_vm1, %v3673_v0  ;;  %v3677_v37 = vld [vmem:[%s6457_s17 + $0x59] sm:$0xff] }
  0xe3   : > { %5604 = vmatprep.mubr.msk.f32.mxu1 %vm947_vm1, %v7918_v48  ;;  %5804 = vmatprep.mubr.msk.f32.mxu0 %vm947_vm1, %v3674_v58  ;;  %v7921_v0 = vld [vmem:[#allocation11_spill] sm:$0xff]  ;;  %v2062_v58 = vmul.f32 %v6799_v18, %v6836_v47  ;;  %v3682_v48 = vld [vmem:[%s6457_s17 + $0x81] sm:$0xff]  ;;  %v2066_v47 = vmul.f32 %v7882_v43, %v6896_v4 }
  0xe4   : > { %v3685_v18 = vld [vmem:[%s6457_s17 + $0x99] sm:$0xff]  ;;  %v3690_v43 = vld [vmem:[%s6457_s17 + $0xc1] sm:$0xff] }
  0xe5   : > { %v3689_v4 = vld [vmem:[%s6457_s17 + $0xb9] sm:$0xff] }
  0xe6   : > { %5605 = vmatmul.mubr.msk.f32.gmra.mrb[4].mxu1 %vm947_vm1, %v6751_v52  ;;  %5805 = vmatmul.mubr.msk.f32.gmra.mrb[4].mxu0 %vm947_vm1, %v3675_v27  ;;  %v3679_v52 = vld [vmem:[%s6457_s17 + $0x69] sm:$0xff]  ;;  %v2064_v27 = vmul.f32 %v6833_v46, %v6866_v32  ;;  %v2068_v32 = vmul.f32 %v7888_v63, %v7881_v42  ;;  %v3692_v63 = vld [vmem:[%s6457_s17 + $0xd1] sm:$0xff] }
  0xe7   : > { %5607 = vmatprep.mubr.msk.f32.mxu1 %vm947_vm1, %v7919_v9  ;;  %5807 = vmatprep.mubr.msk.f32.mxu0 %vm947_vm1, %v3676_v11  ;;  %v3684_v11 = vld [vmem:[%s6457_s17 + $0x91] sm:$0xff]  ;;  %v3687_v46 = vld [vmem:[%s6457_s17 + $0xa9] sm:$0xff] }
  0xe8   : > { %v3691_v42 = vld [vmem:[%s6457_s17 + $0xc9] sm:$0xff] }
  0xea   : > { %5608 = vmatmul.mubr.msk.f32.gmra.mrb[6].mxu1 %vm947_vm1, %v6785_v13  ;;  %5808 = vmatmul.mubr.msk.f32.gmra.mrb[6].mxu0 %vm947_vm1, %v3677_v37  ;;  %v3681_v13 = vld [vmem:[%s6457_s17 + $0x79] sm:$0xff]  ;;  %v4064_v37 = vld [vmem:[%s6457_s17 + $0x4a] sm:$0xff] }
  0xeb   : > { %5610 = vmatprep.mubr.msk.f32.mxu1 %vm947_vm1, %v7920_v16  ;;  %5810 = vmatprep.mubr.msk.f32.mxu0 %vm947_vm1, %v3678_v12  ;;  %v4063_v12 = vld [vmem:[%s6457_s17 + $0x42] sm:$0xff]  ;;  %v4065_v16 = vld [vmem:[%s6457_s17 + $0x52] sm:$0xff] }
  0xee   : > { %5611 = vmatmul.mubr.msk.f32.gmra.mrb[8].mxu1 %vm947_vm1, %v6819_v36  ;;  %5811 = vmatmul.mubr.msk.f32.gmra.mrb[8].mxu0 %vm947_vm1, %v3679_v52  ;;  %v3683_v36 = vld [vmem:[%s6457_s17 + $0x89] sm:$0xff] }
  0xef   : > { %5613 = vmatprep.mubr.msk.f32.mxu1 %vm947_vm1, %v7921_v0  ;;  %5813 = vmatprep.mubr.msk.f32.mxu0 %vm947_vm1, %v3680_v28  ;;  %v4067_v28 = vld [vmem:[%s6457_s17 + $0x62] sm:$0xff] }
  0xf2   : > { %5614 = vmatmul.mubr.msk.f32.gmra.mrb[10].mxu1 %vm947_vm1, %v6849_v2  ;;  %5814 = vmatmul.mubr.msk.f32.gmra.mrb[10].mxu0 %vm947_vm1, %v3681_v13  ;;  %v3686_v2 = vld [vmem:[%s6457_s17 + $0xa1] sm:$0xff]  ;;  %v4069_v13 = vld [vmem:[%s6457_s17 + $0x72] sm:$0xff] }
  0xf3   : > { %5616 = vmatprep.mubr.msk.f32.mxu1 %vm947_vm1, %v2062_v58  ;;  %5816 = vmatprep.mubr.msk.f32.mxu0 %vm947_vm1, %v3682_v48  ;;  %v7931_v58 = vld [vmem:[#allocation46_spill] sm:$0xff]  ;;  %v7932_v48 = vld [vmem:[#allocation41_spill] sm:$0xff] }
  0xf6   : > { %5617 = vmatmul.mubr.msk.f32.gmra.mrb[12].mxu1 %vm947_vm1, %v6879_v50  ;;  %5817 = vmatmul.mubr.msk.f32.gmra.mrb[12].mxu0 %vm947_vm1, %v3683_v36  ;;  %v3688_v50 = vld [vmem:[%s6457_s17 + $0xb1] sm:$0xff]  ;;  %v4118_v36 = vmul.f32 %v7932_v48, %v7931_v58 }
  0xf7   : > { %5619 = vmatprep.mubr.msk.f32.mxu1 %vm947_vm1, %v2064_v27  ;;  %5819 = vmatprep.mubr.msk.f32.mxu0 %vm947_vm1, %v3684_v11  ;;  %v7933_v27 = vld [vmem:[#allocation50_spill] sm:$0xff]  ;;  %v7934_v11 = vld [vmem:[#allocation45_spill] sm:$0xff] }
  0xfa   : > { %5620 = vmatmul.mubr.msk.f32.gmra.mrb[14].mxu1 %vm947_vm1, %v6909_v33  ;;  %5820 = vmatmul.mubr.msk.f32.gmra.mrb[14].mxu0 %vm947_vm1, %v3685_v18  ;;  %v2070_v33 = vmul.f32 %v7893_v60, %v7887_v19  ;;  %v2074_v19 = vmul.f32 %v7901_v41, %v7016_v31  ;;  %v3694_v60 = vld [vmem:[%s6457_s17 + $0xe1] sm:$0xff]  ;;  %v3697_v31 = vld [vmem:[%s6457_s17 + $0xf9] sm:$0xff]  ;;  %v4120_v18 = vmul.f32 %v7934_v11, %v7933_v27 }
  0xfb   : > { %5622 = vmatprep.mubr.msk.f32.mxu1 %vm947_vm1, %v2066_v47  ;;  %5822 = vmatprep.mubr.msk.f32.mxu0 %vm947_vm1, %v3686_v2  ;;  %v3698_v41 = vld [vmem:[%s6457_s17 + $0x101] sm:$0xff]  ;;  %v7935_v47 = vld [vmem:[#allocation51_spill] sm:$0xff] }
  0xfc   : > { %v4090_v2 = vld [vmem:[%s6457_s17 + $0x11a] sm:$0xff] }
  0xfe   : > { %5623 = vmatmul.mubr.msk.f32.gmra.mrb[16].mxu1 %vm947_vm1, %v7883_v56  ;;  %5823 = vmatmul.mubr.msk.f32.gmra.mrb[16].mxu0 %vm947_vm1, %v3687_v46  ;;  %v2072_v56 = vmul.f32 %v7897_v20, %v7892_v49  ;;  %v2076_v49 = vmul.f32 %v7905_v7, %v7045_v35  ;;  %v3696_v20 = vld [vmem:[%s6457_s17 + $0xf1] sm:$0xff]  ;;  %v2080_v35 = vmul.f32 %v7912_v23, %v7252_v53  ;;  %v4062_v53 = vld [vmem:[%s6457_s17 + $0x3a] sm:$0xff] }
  0xff   : > { %5625 = vmatprep.mubr.msk.f32.mxu1 %vm947_vm1, %v2068_v32  ;;  %5825 = vmatprep.mubr.msk.f32.mxu0 %vm947_vm1, %v3688_v50  ;;  %v3700_v7 = vld [vmem:[%s6457_s17 + $0x111] sm:$0xff]  ;;  %v4094_v9 = vmul.f32 %v6613_v6, %v4062_v53  ;;  %v7936_v32 = vld [vmem:[#allocation49_spill] sm:$0xff] }
 0x100   : > { %v4061_v23 = vld [vmem:[%s6457_s17 + $0x32] sm:$0xff]  ;;  %v4068_v6 = vld [vmem:[%s6457_s17 + $0x6a] sm:$0xff]  ;;  %v4122_v50 = vmul.f32 %v7936_v32, %v4090_v2 }
 0x101   : > { %v4100_v0 = vmul.f32 %v6756_v54, %v4068_v6  ;;  %v4106_v54 = vmul.f32 %v7879_v29, %v7889_v45  ;;  %v7923_v29 = vld [vmem:[#allocation27_spill] sm:$0xff]  ;;  %v7926_v45 = vld [vmem:[#allocation32_spill] sm:$0xff] }
 0x102   : > { %5626 = vmatmul.mubr.msk.f32.gmra.mrb[18].mxu1 %vm947_vm1, %v6969_v10  ;;  %5826 = vmatmul.mubr.msk.f32.gmra.mrb[18].mxu0 %vm947_vm1, %v3689_v4  ;;  %v3693_v10 = vld [vmem:[%s6457_s17 + $0xd9] sm:$0xff] }
 0x103   : > { %5628 = vmatprep.mubr.msk.f32.mxu1 %vm947_vm1, %v2070_v33  ;;  %5828 = vmatprep.mubr.msk.f32.mxu0 %vm947_vm1, %v3690_v43  ;;  %v4089_v46 = vld [vmem:[%s6457_s17 + $0x112] sm:$0xff] }
 0x106   : > { %5629 = vmatmul.mubr.msk.f32.gmra.mrb[20].mxu1 %vm947_vm1, %v6999_v51  ;;  %5829 = vmatmul.mubr.msk.f32.gmra.mrb[20].mxu0 %vm947_vm1, %v3691_v42  ;;  %v3695_v51 = vld [vmem:[%s6457_s17 + $0xe9] sm:$0xff] }
 0x107   : > { %5631 = vmatprep.mubr.msk.f32.mxu1 %vm947_vm1, %v2072_v56  ;;  %5831 = vmatprep.mubr.msk.f32.mxu0 %vm947_vm1, %v3692_v63  ;;  %v6352_v56 = vmov 0.00390625  }
 0x10a   : > { %5632 = vmatmul.mubr.msk.f32.gmra.mrb[22].mxu1 %vm947_vm1, %v7028_v24  ;;  %5832 = vmatmul.mubr.msk.f32.gmra.mrb[22].mxu0 %vm947_vm1, %v3693_v10  ;;  %v2078_v24 = vmul.f32 %v7909_v55, %v7073_v34  ;;  %v4060_v34 = vld [vmem:[%s6457_s17 + $0x2a] sm:$0xff]  ;;  %v4059_v55 = vld [vmem:[%s6457_s17 + $0x22] sm:$0xff] }
 0x10b   : > { %5634 = vmatprep.mubr.msk.f32.mxu1 %vm947_vm1, %v2074_v19  ;;  %5834 = vmatprep.mubr.msk.f32.mxu0 %vm947_vm1, %v3694_v60 }
 0x10e   : > { %5635 = vmatmul.mubr.msk.f32.gmra.mrb[24].mxu1 %vm947_vm1, %v7056_v1  ;;  %5835 = vmatmul.mubr.msk.f32.gmra.mrb[24].mxu0 %vm947_vm1, %v3695_v51  ;;  %v3699_v1 = vld [vmem:[%s6457_s17 + $0x109] sm:$0xff] }
 0x10f   : > { %5637 = vmatprep.mubr.msk.f32.mxu1 %vm947_vm1, %v2076_v49  ;;  %5837 = vmatprep.mubr.msk.f32.mxu0 %vm947_vm1, %v3696_v20 }
 0x112   : > { %5638 = vmatmul.mubr.msk.f32.gmra.mrb[26].mxu1 %vm947_vm1, %v7084_v5  ;;  %5838 = vmatmul.mubr.msk.f32.gmra.mrb[26].mxu0 %vm947_vm1, %v3697_v31  ;;  %v3701_v5 = vld [vmem:[%s6457_s17 + $0x119] sm:$0xff] }
 0x113   : > { %5640 = vmatprep.mubr.msk.f32.mxu1 %vm947_vm1, %v2078_v24  ;;  %5840 = vmatprep.mubr.msk.f32.mxu0 %vm947_vm1, %v3698_v41 }
 0x116   : > { %5641 = vmatmul.mubr.msk.f32.gmra.mrb[28].mxu1 %vm947_vm1, %v7106_v3  ;;  %5841 = vmatmul.mubr.msk.f32.gmra.mrb[28].mxu0 %vm947_vm1, %v3699_v1  ;;  %v4092_v3 = vmul.f32 %v6586_v57, %v4060_v34  ;;  %v4066_v57 = vld [vmem:[%s6457_s17 + $0x5a] sm:$0xff]  ;;  %s5094_s17 = sshll.u32 %s6407_s22, 4  ;;  %s6355_s22 = smov [#allocation2]  }
 0x117   : > { %5643 = vmatprep.mubr.msk.f32.mxu1 %vm947_vm1, %v2080_v35  ;;  %5843 = vmatprep.mubr.msk.f32.mxu0 %vm947_vm1, %v3700_v7  ;;  %v4098_v52 = vmul.f32 %v6720_v39, %v4066_v57  ;;  %v4104_v39 = vmul.f32 %v6824_v38, %v7884_v61  ;;  %v4110_v38 = vmul.f32 %v7890_v30, %v7898_v26  ;;  %v7928_v30 = vld [vmem:[#allocation42_spill] sm:$0xff]  ;;  %s7694_s6 = scalar_lea.hbm %s7741_s5, %s5094_s17  ;;  %s6291_s9 = sshll.u32 %s6355_s22, 4  ;;  %s6292_s9 = int_to_ptr.vmem [resolvable:$false] %s6291_s9 }
 0x118   : > { %s6293_s10 = scalar_lea.vmem %s6292_s9, 32  ;;  %p6294_p0 = scmp.lt.s32.totalorder %s7696_s25, %s6292_s9 }
 0x119   : > { %p6295_p1 = scmp.lt.s32.totalorder %s6293_s10, %s6287_s8 }
 0x11a   : > { %5644 = vmatmul.mubr.msk.f32.gmra.mrb[30].mxu1 %vm947_vm1, %v7274_v21  ;;  %5844 = vmatmul.mubr.msk.f32.gmra.mrb[30].mxu0 %vm947_vm1, %v3701_v5  ;;  %v4096_v21 = vmul.f32 %v6666_v25, %v4064_v37  ;;  %v4102_v25 = vmul.f32 %v6790_v15, %v6827_v44  ;;  %v4108_v15 = vmul.f32 %v7885_v62, %v7894_v59  ;;  %v7922_v44 = vld [vmem:[#allocation33_spill] sm:$0xff]  ;;  %v7925_v62 = vld [vmem:[#allocation38_spill] sm:$0xff]  ;;  %v7927_v59 = vld [vmem:[#allocation39_spill] sm:$0xff] }
 0x11b   : > { %5848 = vmatprep.mubr.msk.f32.mxu0 %vm947_vm1, %v4059_v55  ;;  %v4112_v61 = vmul.f32 %v7923_v29, %v7922_v44  ;;  %4614 = vmatprep.mubr.f32.mxu1 %v6352_v56  ;;  %p6296_p2 = por %p6295_p1, %p6294_p0 }
 0x11d   : > { %p6297_p3 = pnand %p6296_p2, %p6290_p13 }
 0x11e   : > { %5849 = vmatmul.mubr.msk.f32.vlgmr.msra.gmra.mrb[0].mxu0 %vm947_vm1, %v4092_v3 }
 0x11f   : > { %5851 = vmatprep.mubr.msk.f32.mxu0 %vm947_vm1, %v4061_v23 }
 0x122   : > { %5852 = vmatmul.mubr.msk.f32.gmra.mrb[2].mxu0 %vm947_vm1, %v4094_v9 }
 0x123   : > { %5854 = vmatprep.mubr.msk.f32.mxu0 %vm947_vm1, %v4063_v12 }
 0x126   : > { %5855 = vmatmul.mubr.msk.f32.gmra.mrb[4].mxu0 %vm947_vm1, %v4096_v21 }
 0x127   : > { %5857 = vmatprep.mubr.msk.f32.mxu0 %vm947_vm1, %v4065_v16 }
 0x12a   : > { %5858 = vmatmul.mubr.msk.f32.gmra.mrb[6].mxu0 %vm947_vm1, %v4098_v52 }
 0x12b   : > { %5860 = vmatprep.mubr.msk.f32.mxu0 %vm947_vm1, %v4067_v28  ;;  %v7556_v28 = vld [vmem:[%s7738_s2] ss:$0 sm:$0xff] }
 0x12e   : > { %5861 = vmatmul.mubr.msk.f32.gmra.mrb[8].mxu0 %vm947_vm1, %v4100_v0 }
 0x12f   : > { %5863 = vmatprep.mubr.msk.f32.mxu0 %vm947_vm1, %v4069_v13 }
 0x132   : > { %5864 = vmatmul.mubr.msk.f32.gmra.mrb[10].mxu0 %vm947_vm1, %v4102_v25 }
 0x133   : > { %5866 = vmatprep.mubr.msk.f32.mxu0 %vm947_vm1, %v7886_v17  ;;  %v7924_v17 = vld [vmem:[#allocation34_spill] sm:$0xff] }
 0x136   : > { %5867 = vmatmul.mubr.msk.f32.gmra.mrb[12].mxu0 %vm947_vm1, %v4104_v39 }
 0x137   : > { %5869 = vmatprep.mubr.msk.f32.mxu0 %vm947_vm1, %v7891_v14  ;;  %v4114_v14 = vmul.f32 %v7926_v45, %v7925_v62 }
 0x13a   : > { %5870 = vmatmul.mubr.msk.f32.gmra.mrb[14].mxu0 %vm947_vm1, %v4106_v54 }
 0x13b   : > { %5872 = vmatprep.mubr.msk.f32.mxu0 %vm947_vm1, %v7896_v8  ;;  %v7929_v8 = vld [vmem:[#allocation37_spill] sm:$0xff] }
 0x13c   : > { %v4116_v26 = vmul.f32 %v7929_v8, %v7928_v30 }
 0x13e   : > { %5873 = vmatmul.mubr.msk.f32.gmra.mrb[16].mxu0 %vm947_vm1, %v4108_v15 }
 0x13f   : > { %5875 = vmatprep.mubr.msk.f32.mxu0 %vm947_vm1, %v7900_v40  ;;  %v7930_v40 = vld [vmem:[#allocation43_spill] sm:$0xff] }
 0x142   : > { %5876 = vmatmul.mubr.msk.f32.gmra.mrb[18].mxu0 %vm947_vm1, %v4110_v38 }
 0x143   : > { %5878 = vmatprep.mubr.msk.f32.mxu0 %vm947_vm1, %v7924_v17 }
 0x146   : > { %5879 = vmatmul.mubr.msk.f32.gmra.mrb[20].mxu0 %vm947_vm1, %v4112_v61 }
 0x147   : > { %5881 = vmatprep.mubr.msk.f32.mxu0 %vm947_vm1, %v7927_v59 }
 0x14a   : > { %5882 = vmatmul.mubr.msk.f32.gmra.mrb[22].mxu0 %vm947_vm1, %v4114_v14 }
 0x14b   : > { %5884 = vmatprep.mubr.msk.f32.mxu0 %vm947_vm1, %v7930_v40 }
 0x14e   : > { %5885 = vmatmul.mubr.msk.f32.gmra.mrb[24].mxu0 %vm947_vm1, %v4116_v26 }
 0x14f   : > { %5887 = vmatprep.mubr.msk.f32.mxu0 %vm947_vm1, %v7914_v22 }
 0x152   : > { %5888 = vmatmul.mubr.msk.f32.gmra.mrb[26].mxu0 %vm947_vm1, %v4118_v36 }
 0x153   : > { %5890 = vmatprep.mubr.msk.f32.mxu0 %vm947_vm1, %v7935_v47 }
 0x156   : > { %5891 = vmatmul.mubr.msk.f32.gmra.mrb[28].mxu0 %vm947_vm1, %v4120_v18 }
 0x157   : > { %5893 = vmatprep.mubr.msk.f32.mxu0 %vm947_vm1, %v4089_v46 }
 0x15a   : > { %5894 = vmatmul.mubr.msk.f32.gmra.mrb[30].mxu0 %vm947_vm1, %v4122_v50 }
 0x1b1   : > { %v5600_v4 = vpop.f32.mrb[0].mxu1 }
 0x1b2   : > { %v2248_v22 = vpop.f32.mrb[1].mxu1 }
 0x1b5   : > { %v5603_v33 = vpop.f32.mrb[2].mxu1 }
 0x1b6   : > { %v2258_v43 = vpop.f32.mrb[3].mxu1 }
 0x1b9   : > { %v5606_v42 = vpop.f32.mrb[4].mxu1 }
 0x1ba   : > { %v2268_v63 = vpop.f32.mrb[5].mxu1 }
 0x1bd   : > { %v5609_v10 = vpop.f32.mrb[6].mxu1 }
 0x1be   : > { %v2278_v19 = vpop.f32.mrb[7].mxu1 }
 0x1c1   : > { %v5612_v60 = vpop.f32.mrb[8].mxu1 }
 0x1c2   : > { %v2288_v51 = vpop.f32.mrb[9].mxu1 }
 0x1c5   : > { %v7509_v49 = vpop.f32.mrb[10].mxu1 }
 0x1c6   : > { %v7511_v20 = vpop.f32.mrb[11].mxu1 }
 0x1c9   : > { %v7513_v31 = vpop.f32.mrb[12].mxu1 }
 0x1ca   : > { %v7515_v24 = vpop.f32.mrb[13].mxu1 }
 0x1cd   : > { %v7517_v41 = vpop.f32.mrb[14].mxu1 }
 0x1ce   : > { %v7519_v1 = vpop.f32.mrb[15].mxu1 }
 0x1d1   : > { %v7521_v35 = vpop.f32.mrb[16].mxu1 }
 0x1d2   : > { %v7523_v7 = vpop.f32.mrb[17].mxu1 }
 0x1d5   : > { %v7525_v5 = vpop.f32.mrb[18].mxu1 }
 0x1d6   : > { %v7527_v34 = vpop.f32.mrb[19].mxu1 }
 0x1d9   : > { %v7529_v55 = vpop.f32.mrb[20].mxu1 }
 0x1da   : > { %v7531_v3 = vpop.f32.mrb[21].mxu1 }
 0x1dd   : > { %v7533_v53 = vpop.f32.mrb[22].mxu1 }
 0x1de   : > { %v7535_v23 = vpop.f32.mrb[23].mxu1 }
 0x1e1   : > { %v7537_v9 = vpop.f32.mrb[24].mxu1 }
 0x1e2   : > { %v7539_v37 = vpop.f32.mrb[25].mxu1 }
 0x1e5   : > { %v7541_v12 = vpop.f32.mrb[26].mxu1 }
 0x1e6   : > { %v7543_v21 = vpop.f32.mrb[27].mxu1 }
 0x1e9   : > { %v7545_v57 = vpop.f32.mrb[28].mxu1 }
 0x1ea   : > { %v7547_v16 = vpop.f32.mrb[29].mxu1 }
 0x1ed   : > { %v7549_v52 = vpop.f32.mrb[30].mxu1 }
 0x1ee   : > { %v7551_v6 = vpop.f32.mrb[31].mxu1 }
 0x1f1   : > { %v5850_v0 = vpop.f32.mrb[0].mxu0 }
 0x1f2   : > { %v5987_v13 = vadd.f32 %v5850_v0, %v5600_v4  ;;  %v4289_v25 = vpop.f32.mrb[1].mxu0 }
 0x1f3   : > { %v5988_v39 = vadd.f32 %v4289_v25, %v2248_v22 }
 0x1f4   : > { %v4487_v54 = vadd.f32 %v5987_v13, %v7556_v28 }
 0x1f5   : > { %v4486_v15 = vadd.f32 %v5988_v39, %v7556_v28  ;;  %v5853_v38 = vpop.f32.mrb[2].mxu0 }
 0x1f6   : > { %v4519_v44 = vmax.f32 %v4487_v54, 0.0  ;;  %v5989_v29 = vadd.f32 %v5853_v38, %v5603_v33  ;;  %v4299_v61 = vpop.f32.mrb[3].mxu0 }
 0x1f7   : > { %v4518_v17 = vmax.f32 %v4486_v15, 0.0  ;;  %v5990_v62 = vadd.f32 %v4299_v61, %v2258_v43 }
 0x1f8   : > { %v4489_v45 = vadd.f32 %v5989_v29, %v7556_v28 }
 0x1f9   : > { %v7561_v14 = vpack.c.bf16 %v4519_v44, %v4518_v17  ;;  %v4488_v59 = vadd.f32 %v5990_v62, %v7556_v28  ;;  %v5856_v30 = vpop.f32.mrb[4].mxu0 }
 0x1fa   : > { %v4521_v8 = vmax.f32 %v4489_v45, 0.0  ;;  %v5991_v26 = vadd.f32 %v5856_v30, %v5606_v42  ;;  %v4309_v40 = vpop.f32.mrb[5].mxu0 }
 0x1fb   : > { %v4520_v58 = vmax.f32 %v4488_v59, 0.0  ;;  %v5992_v48 = vadd.f32 %v4309_v40, %v2268_v63 }
 0x1fc   : > { %v4491_v36 = vadd.f32 %v5991_v26, %v7556_v28 }
 0x1fd   : > { %v7565_v27 = vpack.c.bf16 %v4521_v8, %v4520_v58  ;;  %v4490_v11 = vadd.f32 %v5992_v48, %v7556_v28  ;;  %v5859_v18 = vpop.f32.mrb[6].mxu0 }
 0x1fe   : > { %v4523_v47 = vmax.f32 %v4491_v36, 0.0  ;;  %v5993_v2 = vadd.f32 %v5859_v18, %v5609_v10  ;;  %v4319_v46 = vpop.f32.mrb[7].mxu0 }
 0x1ff   : > { %v4522_v32 = vmax.f32 %v4490_v11, 0.0  ;;  %v5994_v50 = vadd.f32 %v4319_v46, %v2278_v19 }
 0x200   : > { %v4493_v4 = vadd.f32 %v5993_v2, %v7556_v28 }
 0x201   : > { %v7569_v22 = vpack.c.bf16 %v4523_v47, %v4522_v32  ;;  %v4492_v33 = vadd.f32 %v5994_v50, %v7556_v28  ;;  %v5862_v43 = vpop.f32.mrb[8].mxu0 }
 0x202   : > { %v4525_v42 = vmax.f32 %v4493_v4, 0.0  ;;  %v5995_v63 = vadd.f32 %v5862_v43, %v5612_v60  ;;  %v4329_v0 = vpop.f32.mrb[9].mxu0 }
 0x203   : > { %v4524_v13 = vmax.f32 %v4492_v33, 0.0  ;;  %v5996_v25 = vadd.f32 %v4329_v0, %v2288_v51 }
 0x204   : > { %v4495_v39 = vadd.f32 %v5995_v63, %v7556_v28 }
 0x205   : > { %v7573_v54 = vpack.c.bf16 %v4525_v42, %v4524_v13  ;;  %v4494_v10 = vadd.f32 %v5996_v25, %v7556_v28  ;;  %v5865_v15 = vpop.f32.mrb[10].mxu0 }
 0x206   : > { %v4527_v19 = vmax.f32 %v4495_v39, 0.0  ;;  %v5997_v38 = vadd.f32 %v5865_v15, %v7509_v49  ;;  %v4339_v44 = vpop.f32.mrb[11].mxu0 }
 0x207   : > { %v4526_v29 = vmax.f32 %v4494_v10, 0.0  ;;  %v5998_v61 = vadd.f32 %v4339_v44, %v7511_v20 }
 0x208   : > { %v4497_v17 = vadd.f32 %v5997_v38, %v7556_v28 }
 0x209   : > { %v7579_v60 = vpack.c.bf16 %v4527_v19, %v4526_v29  ;;  %v4496_v51 = vadd.f32 %v5998_v61, %v7556_v28  ;;  %v5868_v62 = vpop.f32.mrb[12].mxu0 }
 0x20a   : > { %v4529_v45 = vmax.f32 %v4497_v17, 0.0  ;;  %v5999_v59 = vadd.f32 %v5868_v62, %v7513_v31  ;;  %v4349_v30 = vpop.f32.mrb[13].mxu0 }
 0x20b   : > { %v4528_v8 = vmax.f32 %v4496_v51, 0.0  ;;  %v6000_v26 = vadd.f32 %v4349_v30, %v7515_v24 }
 0x20c   : > { %v4499_v49 = vadd.f32 %v5999_v59, %v7556_v28 }
 0x20d   : > { %v7585_v40 = vpack.c.bf16 %v4529_v45, %v4528_v8  ;;  %v4498_v20 = vadd.f32 %v6000_v26, %v7556_v28  ;;  %v5871_v58 = vpop.f32.mrb[14].mxu0 }
 0x20e   : > { %v4531_v48 = vmax.f32 %v4499_v49, 0.0  ;;  %v6001_v36 = vadd.f32 %v5871_v58, %v7517_v41  ;;  %v4359_v11 = vpop.f32.mrb[15].mxu0 }
 0x20f   : > { %v4530_v18 = vmax.f32 %v4498_v20, 0.0  ;;  %v6002_v47 = vadd.f32 %v4359_v11, %v7519_v1 }
 0x210   : > { %v4501_v31 = vadd.f32 %v6001_v36, %v7556_v28 }
 0x211   : > { %v7591_v2 = vpack.c.bf16 %v4531_v48, %v4530_v18  ;;  %v4500_v24 = vadd.f32 %v6002_v47, %v7556_v28  ;;  %v5874_v46 = vpop.f32.mrb[16].mxu0 }
 0x212   : > { %v4533_v32 = vmax.f32 %v4501_v31, 0.0  ;;  %v6003_v50 = vadd.f32 %v5874_v46, %v7521_v35  ;;  %v4369_v4 = vpop.f32.mrb[17].mxu0 }
 0x213   : > { %v4532_v33 = vmax.f32 %v4500_v24, 0.0  ;;  %v6004_v43 = vadd.f32 %v4369_v4, %v7523_v7 }
 0x214   : > { %v4503_v41 = vadd.f32 %v6003_v50, %v7556_v28 }
 0x215   : > { %v7597_v42 = vpack.c.bf16 %v4533_v32, %v4532_v33  ;;  %v4502_v1 = vadd.f32 %v6004_v43, %v7556_v28  ;;  %v5877_v63 = vpop.f32.mrb[18].mxu0 }
 0x216   : > { %v4535_v0 = vmax.f32 %v4503_v41, 0.0  ;;  %v6005_v13 = vadd.f32 %v5877_v63, %v7525_v5  ;;  %v4379_v25 = vpop.f32.mrb[19].mxu0 }
 0x217   : > { %v4534_v39 = vmax.f32 %v4502_v1, 0.0  ;;  %v6006_v10 = vadd.f32 %v4379_v25, %v7527_v34 }
 0x218   : > { %v4505_v35 = vadd.f32 %v6005_v13, %v7556_v28 }
 0x219   : > { %v4504_v15 = vadd.f32 %v6006_v10, %v7556_v28  ;;  %v5880_v19 = vpop.f32.mrb[20].mxu0  ;;  %v5931_v7 = vpack.c.bf16 %v4535_v0, %v4534_v39 }
 0x21a   : > { %v4537_v38 = vmax.f32 %v4505_v35, 0.0  ;;  %v6007_v44 = vadd.f32 %v5880_v19, %v7529_v55  ;;  %v4389_v29 = vpop.f32.mrb[21].mxu0 }
 0x21b   : > { %v4536_v61 = vmax.f32 %v4504_v15, 0.0  ;;  %v6008_v17 = vadd.f32 %v4389_v29, %v7531_v3  ;;  %5932 = vmatprep.subr.bf16.mxu1 %v5931_v7  ;;  %v225_v7 = vld [vmem:[%s7739_s3 + $0x10] sm:$0xff] }
 0x21c   : > { %v4507_v5 = vadd.f32 %v6007_v44, %v7556_v28  ;;  %5934 = vmatpush3.bf16.msra.mxu1 %v7561_v14  ;;  %v228_v44 = vld [vmem:[%s7739_s3 + $0x28] sm:$0xff] }
 0x21d   : > { %v4506_v34 = vadd.f32 %v6008_v17, %v7556_v28  ;;  %v5883_v51 = vpop.f32.mrb[22].mxu0  ;;  %v5935_v62 = vpack.c.bf16 %v4537_v38, %v4536_v61  ;;  %v229_v61 = vld [vmem:[%s7739_s3 + $0x30] sm:$0xff] }
 0x21e   : > { %v4539_v45 = vmax.f32 %v4507_v5, 0.0  ;;  %v6009_v59 = vadd.f32 %v5883_v51, %v7533_v53  ;;  %v4399_v30 = vpop.f32.mrb[23].mxu0  ;;  %v231_v5 = vld [vmem:[%s7739_s3 + $0x40] sm:$0xff] }
 0x21f   : > { %v4538_v8 = vmax.f32 %v4506_v34, 0.0  ;;  %v6010_v55 = vadd.f32 %v4399_v30, %v7535_v23  ;;  %5936 = vmatprep.subr.bf16.mxu1 %v5935_v62  ;;  %v232_v34 = vld [vmem:[%s7739_s3 + $0x48] sm:$0xff]  ;;  %v233_v62 = vld [vmem:[%s7739_s3 + $0x50] sm:$0xff]  ;;  %v235_v30 = vld [vmem:[%s7739_s3 + $0x60] sm:$0xff] }
 0x220   : > { %v4509_v26 = vadd.f32 %v6009_v59, %v7556_v28  ;;  %5938 = vmatpush3.bf16.msra.mxu1 %v7565_v27  ;;  %v5976_v51 = vpack.c.bf16 %v232_v34, %v231_v5 }
 0x221   : > { %v4508_v3 = vadd.f32 %v6010_v55, %v7556_v28  ;;  %v5886_v49 = vpop.f32.mrb[24].mxu0  ;;  %v5939_v14 = vpack.c.bf16 %v4539_v45, %v4538_v8  ;;  %v234_v45 = vld [vmem:[%s7739_s3 + $0x58] sm:$0xff]  ;;  %v236_v8 = vld [vmem:[%s7739_s3 + $0x68] sm:$0xff] }
 0x222   : > { %v4541_v20 = vmax.f32 %v4509_v26, 0.0  ;;  %v6011_v58 = vadd.f32 %v5886_v49, %v7537_v9  ;;  %v4409_v48 = vpop.f32.mrb[25].mxu0  ;;  %v5979_v59 = vpack.c.bf16 %v234_v45, %v233_v62  ;;  %v5982_v55 = vpack.c.bf16 %v236_v8, %v235_v30  ;;  %v237_v26 = vld [vmem:[%s7739_s3 + $0x70] sm:$0xff] }
 0x223   : > { %v4540_v36 = vmax.f32 %v4508_v3, 0.0  ;;  %v6012_v53 = vadd.f32 %v4409_v48, %v7539_v37  ;;  %5940 = vmatprep.subr.bf16.mxu1 %v5939_v14  ;;  %v238_v3 = vld [vmem:[%s7739_s3 + $0x78] sm:$0xff]  ;;  %v7937_v14 = vmov 0.0  }
 0x224   : > { %v4511_v11 = vadd.f32 %v6011_v58, %v7556_v28  ;;  %5942 = vmatpush3.bf16.msra.mxu1 %v7569_v22  ;;  %v5985_v49 = vpack.c.bf16 %v238_v3, %v237_v26 }
 0x225   : > { %v4510_v23 = vadd.f32 %v6012_v53, %v7556_v28  ;;  %v5889_v18 = vpop.f32.mrb[26].mxu0  ;;  %v5943_v27 = vpack.c.bf16 %v4541_v20, %v4540_v36  ;;  %v239_v36 = vld [vmem:[%s7740_s4] sm:$0x1] }
 0x226   : > { %v4543_v47 = vmax.f32 %v4511_v11, 0.0  ;;  %v6013_v31 = vadd.f32 %v5889_v18, %v7541_v12  ;;  %v4419_v24 = vpop.f32.mrb[27].mxu0 }
 0x227   : > { %v4542_v46 = vmax.f32 %v4510_v23, 0.0  ;;  %v6014_v9 = vadd.f32 %v4419_v24, %v7543_v21  ;;  %5944 = vmatprep.subr.bf16.mxu1 %v5943_v27 }
 0x228   : > { %v4513_v32 = vadd.f32 %v6013_v31, %v7556_v28  ;;  %5946 = vmatpush3.bf16.msra.mxu1 %v7573_v54 }
 0x229   : > { %v4512_v37 = vadd.f32 %v6014_v9, %v7556_v28  ;;  %v5892_v50 = vpop.f32.mrb[28].mxu0  ;;  %v5947_v22 = vpack.c.bf16 %v4543_v47, %v4542_v46 }
 0x22a   : > { %v4545_v4 = vmax.f32 %v4513_v32, 0.0  ;;  %v6015_v33 = vadd.f32 %v5892_v50, %v7545_v57  ;;  %v4429_v43 = vpop.f32.mrb[29].mxu0 }
 0x22b   : > { %v4544_v41 = vmax.f32 %v4512_v37, 0.0  ;;  %v6016_v12 = vadd.f32 %v4429_v43, %v7547_v16  ;;  %5948 = vmatprep.subr.bf16.mxu1 %v5947_v22 }
 0x22c   : > { %v4515_v1 = vadd.f32 %v6015_v33, %v7556_v28  ;;  %5950 = vmatpush3.bf16.msra.mxu1 %v7579_v60 }
 0x22d   : > { %v4514_v21 = vadd.f32 %v6016_v12, %v7556_v28  ;;  %v5895_v63 = vpop.f32.mrb[30].mxu0  ;;  %v5951_v54 = vpack.c.bf16 %v4545_v4, %v4544_v41 }
 0x22e   : > { %v4547_v0 = vmax.f32 %v4515_v1, 0.0  ;;  %v6017_v13 = vadd.f32 %v5895_v63, %v7549_v52  ;;  %v4439_v25 = vpop.f32.mrb[31].mxu0  ;;  %v223_v52 = vld [vmem:[%s7739_s3] sm:$0xff] }
 0x22f   : > { %v4546_v39 = vmax.f32 %v4514_v21, 0.0  ;;  %v6018_v57 = vadd.f32 %v4439_v25, %v7551_v6  ;;  %5952 = vmatprep.subr.bf16.mxu1 %v5951_v54  ;;  %v224_v6 = vld [vmem:[%s7739_s3 + $0x8] sm:$0xff] }
 0x230   : > { %v4517_v10 = vadd.f32 %v6017_v13, %v7556_v28  ;;  %5954 = vmatpush3.bf16.msra.mxu1 %v7585_v40  ;;  %v5964_v40 = vpack.c.bf16 %v224_v6, %v223_v52 }
 0x231   : > { %v4516_v16 = vadd.f32 %v6018_v57, %v7556_v28  ;;  %v5955_v35 = vpack.c.bf16 %v4547_v0, %v4546_v39  ;;  %v6353_v28 = vmov 0.0|0.0  }
 0x232   : > { %v4549_v60 = vmax.f32 %v4517_v10, 0.0 }
 0x233   : > { %v4548_v15 = vmax.f32 %v4516_v16, 0.0  ;;  %5956 = vmatprep.subr.bf16.mxu1 %v5955_v35 }
 0x234   : > { %5958 = vmatpush3.bf16.msra.mxu1 %v7591_v2  ;;  %v226_v2 = vld [vmem:[%s7739_s3 + $0x18] sm:$0xff] }
 0x235   : > { %v5959_v19 = vpack.c.bf16 %v4549_v60, %v4548_v15  ;;  %v5967_v38 = vpack.c.bf16 %v226_v2, %v225_v7 }
 0x237   : > { %5960 = vmatprep.subr.bf16.mxu1 %v5959_v19 }
 0x238   : > { %5962 = vmatpush3.bf16.msra.mxu1 %v7597_v42  ;;  %v227_v42 = vld [vmem:[%s7739_s3 + $0x20] sm:$0xff] }
 0x239   : > { %5963 = vmatprep.subr.bf16.mxu1 %v6353_v28  ;;  %v5970_v29 = vpack.c.bf16 %v228_v44, %v227_v42 }
 0x23b   : > { %4615 = vmatmul.mubr.f32.vlgmr.msra.gmra.mrb[32].mxu1 %v6352_v56  ;;  %v230_v56 = vld [vmem:[%s7739_s3 + $0x38] sm:$0xff] }
 0x23c   : > { %5965 = vmatpush3.bf16.msra.mxu1 %v5964_v40  ;;  %v5973_v17 = vpack.c.bf16 %v230_v56, %v229_v61  ;;  %5928 = vmatprep.mubr.msk.f32.mxu1 %vm6354_vm0, %v7937_v14 }
 0x23d   : > { %5966 = vmatprep.subr.bf16.mxu1 %v6353_v28 }
 0x240   : > { %5968 = vmatpush3.bf16.msra.mxu1 %v5967_v38 }
 0x241   : > { %5969 = vmatprep.subr.bf16.mxu1 %v6353_v28 }
 0x244   : > { %5971 = vmatpush3.bf16.msra.mxu1 %v5970_v29 }
 0x245   : > { %5972 = vmatprep.subr.bf16.mxu1 %v6353_v28 }
 0x248   : > { %5974 = vmatpush3.bf16.msra.mxu1 %v5973_v17 }
 0x249   : > { %5975 = vmatprep.subr.bf16.mxu1 %v6353_v28 }
 0x24c   : > { %5977 = vmatpush3.bf16.msra.mxu1 %v5976_v51 }
 0x24d   : > { %5978 = vmatprep.subr.bf16.mxu1 %v6353_v28 }
 0x250   : > { %5980 = vmatpush3.bf16.msra.mxu1 %v5979_v59 }
 0x251   : > { %5981 = vmatprep.subr.bf16.mxu1 %v6353_v28 }
 0x254   : > { %5983 = vmatpush3.bf16.msra.mxu1 %v5982_v55 }
 0x255   : > { %5984 = vmatprep.subr.bf16.mxu1 %v6353_v28 }
 0x258   : > { %5986 = vmatpush3.bf16.msra.mxu1 %v5985_v49 }
 0x30e   : > { %v5426_v20 = vpop.f32.mrb[32].mxu1 }
 0x30f   : > { %v5427_v58 = vpop.f32.mrb[33].mxu1 }
 0x310   : > { %v5428_v48 = vadd.f32 %v5427_v58, %v5426_v20 }
 0x312   : > { %5929 = vmatmul.mubr.f32.vlgmr.msra.gmra.mrb[34].mxu1 %v5428_v48 }
 0x3e5   : > { %v4686_v53 = vpop.f32.mrb[34].mxu1 }
 0x3e6   : > { %v4687_v11 = vadd.f32 %v4686_v53, %v239_v36  ;;  %v5930_v23 = vpop.f32.mrb[35].mxu1 }
 0x3e8   : > { %4690 = vst [vmem:[%s216_s23] sm:$0x1] %v4687_v11 }
 0x3e9   : > { %6300 = shalt.err (!%p6297_p3)
}
 0x3ea   : > { %s6301_s11 = scalar_lea.hbm %s7694_s6, 16  ;;  %s6305_s14 = scalar_lea.hbm %s7741_s5, 32 }
 0x3eb   : > { %p6302_p4 = scmp.ne.s32.totalorder %s7694_s6, %s6301_s11  ;;  %p6306_p9 = scmp.lt.u32.totalorder %s7694_s6, %s7741_s5 }
 0x3ec   : > { %p6307_p10 = scmp.lt.u32.totalorder %s6305_s14, %s6301_s11  ;;  %p6309_p12 = scmp.lt.u32.totalorder %s6301_s11, %s7694_s6 }
 0x3ed   : > { %p6303_p7 = pnand %p6302_p4, %p6424_p5 }
 0x3ee   : > { %p6308_p11 = por %p6307_p10, %p6306_p9 }
 0x3ef   : > { %p6304_p8 = pneg %p6303_p7 }
 0x3f0   : > { %p6310_p13 = por %p6309_p12, %p6308_p11 }
 0x3f2   : > { %p6311_p0 = pnand %p6310_p13, %p6304_p8 }
 0x3f4   : > { %6314 = shalt.err (!%p6311_p0)
}
 0x3f5   : > { %6244 = dma.vmem_to_hbm [thread:$0]  (%p6424_p5), %s7696_s25, 16, %s7694_s6, %s4692_s7  }
 0x3f6 PF: > { %p6250_p1 = scmp.ge.s32.totalorder %s6349_s21, 2  ;;  %s4716_s17 = sand.u32 1, %s6337_s18  }
 0x3f7   : > { %s4717_s23 = scalar_lea.sflag [#allocation3], %s4716_s17 }
 0x3f8   : > { %p6247_p2 = pnand %p6250_p1, %p6428_p6 }
 0x3fa   : > { %6332 = dma.done.wait (!%p6247_p2), %s4717_s23, 16  }
 0x3fb   : > { %6334 = vsyncadd (!%p6247_p2), %s4717_s23, 4294967280  ;;  %p15_p3 = scmp.ge.s32.totalorder %s6411_s24, 4   ;;  %s7938_s18 = smov %s6341_s19 }
 0x3fc   : > { %s7939_s19 = smov %s6345_s20  ;;  %s7940_s20 = smov %s6422_s27 }
 0x3fd   : > { %s7941_s21 = smov %s6411_s24  ;;  %17 = sbr.rel (!%p15_p3) target bundleno = 3 (0x3), region = 75 }
 0x404   :  { %4721 = vsyncpa [#allocation3], 1 }
 0x405   :  { %4723 = vsyncpa [#allocation3 + $0x1], 1 }

</bundles_post_ra>
